<compile_context>
chip_gen: v7x
topology: tpu7x:2x2x1
jax: 0.10.0
libtpu: 0.0.40
codegen_flags: <defaults>
</compile_context>

<pallas_src>
import functools

import jax
import jax.numpy as jnp
from jax.experimental import pallas as pl
from jax.experimental.pallas import tpu as pltpu


# ----------------------------- Pallas kernels --------------------------------

def _conv_norm_kernel(a_ref, w_ref, o_ref, *, n_valid, apply_relu):
    """Fused im2col-GEMM + RemoveChannelMeanStd (+ relu) for Bt samples.

    a_ref : (Bt, M, K)   bf16  patches (M = OH*OW spatial positions per sample)
    w_ref : (K, Np)      bf16  weights, Np = Cout padded to 128 lanes (zero pad)
    o_ref : (Bt, M, Np)  bf16  normalized (+relu'ed) conv output; padded lanes = 0
    """
    bt, m, k = a_ref.shape
    acc = jnp.dot(a_ref[...].reshape(bt * m, k), w_ref[...],
                  preferred_element_type=jnp.float32)
    acc = acc.reshape(bt, m, acc.shape[-1])                    # (Bt, M, Np) f32
    mean = jnp.mean(acc, axis=1, keepdims=True)                # per (sample, channel)
    d = acc - mean
    var = jnp.sum(d * d, axis=1, keepdims=True) * (1.0 / (m - 1))  # unbiased (torch .std())
    if n_valid < var.shape[-1]:
        # Padded lanes have d == 0 exactly; force var = 1 so they stay 0 (no NaN),
        # masking only the (Bt,1,Np) row instead of the whole slab.
        lane = jax.lax.broadcasted_iota(jnp.int32, var.shape, 2)
        var = jnp.where(lane < n_valid, var, 1.0)
    y = d * jax.lax.rsqrt(var)                                 # no eps (matches reference)
    if apply_relu:
        y = jnp.maximum(y, 0.0)
    o_ref[...] = y.astype(o_ref.dtype)


def _conv_norm_add_relu_kernel(a_ref, w_ref, sc_ref, o_ref, *, n_valid):
    """Fused im2col-GEMM + RemoveChannelMeanStd + residual add + relu.

    sc_ref : (Bt, M, Np) bf16 shortcut (padded lanes zero).
    """
    bt, m, k = a_ref.shape
    acc = jnp.dot(a_ref[...].reshape(bt * m, k), w_ref[...],
                  preferred_element_type=jnp.float32)
    acc = acc.reshape(bt, m, acc.shape[-1])
    mean = jnp.mean(acc, axis=1, keepdims=True)
    d = acc - mean
    var = jnp.sum(d * d, axis=1, keepdims=True) * (1.0 / (m - 1))
    if n_valid < var.shape[-1]:
        lane = jax.lax.broadcasted_iota(jnp.int32, var.shape, 2)
        var = jnp.where(lane < n_valid, var, 1.0)
    y = d * jax.lax.rsqrt(var)
    out = jnp.maximum(y + sc_ref[...].astype(jnp.float32), 0.0)
    o_ref[...] = out.astype(o_ref.dtype)


# ----------------------------- kernel wrappers --------------------------------

def _round_up(x, m):
    return ((x + m - 1) // m) * m


def _pick_bt(n, m, target_rows=512):
    """Largest divisor Bt of n with Bt*m <= target_rows; keep grid length >= 2
    when n >= 2 so both v7x TensorCores get work (no-op on v5e/v6e)."""
    best = 1
    for bt in range(1, n + 1):
        if n % bt:
            continue
        if bt * m > target_rows:
            break
        if n >= 2 and n // bt < 2:
            continue
        best = bt
    return best


def _conv_norm(patches, w, *, n_valid, apply_relu):
    """patches:(N,M,K) bf16, w:(K,Np) bf16 -> (N,M,Np) bf16."""
    n, m, k = patches.shape
    np_ = w.shape[1]
    assert m > 1, "unbiased std needs >1 spatial element per channel"
    bt = _pick_bt(n, m)
    return pl.pallas_call(
        functools.partial(_conv_norm_kernel, n_valid=n_valid, apply_relu=apply_relu),
        out_shape=jax.ShapeDtypeStruct((n, m, np_), jnp.bfloat16),
        grid=(n // bt,),
        in_specs=[
            pl.BlockSpec((bt, m, k), lambda i: (i, 0, 0)),
            pl.BlockSpec((k, np_), lambda i: (0, 0)),
        ],
        out_specs=pl.BlockSpec((bt, m, np_), lambda i: (i, 0, 0)),
        compiler_params=pltpu.CompilerParams(dimension_semantics=("parallel",)),
    )(patches, w)


def _conv_norm_add_relu(patches, w, shortcut, *, n_valid):
    """Same as _conv_norm but fuses `relu(norm(conv) + shortcut)`. shortcut:(N,M,Np) bf16."""
    n, m, k = patches.shape
    np_ = w.shape[1]
    assert m > 1, "unbiased std needs >1 spatial element per channel"
    bt = _pick_bt(n, m)
    return pl.pallas_call(
        functools.partial(_conv_norm_add_relu_kernel, n_valid=n_valid),
        out_shape=jax.ShapeDtypeStruct((n, m, np_), jnp.bfloat16),
        grid=(n // bt,),
        in_specs=[
            pl.BlockSpec((bt, m, k), lambda i: (i, 0, 0)),
            pl.BlockSpec((k, np_), lambda i: (0, 0)),
            pl.BlockSpec((bt, m, np_), lambda i: (i, 0, 0)),
        ],
        out_specs=pl.BlockSpec((bt, m, np_), lambda i: (i, 0, 0)),
        compiler_params=pltpu.CompilerParams(dimension_semantics=("parallel",)),
    )(patches, w, shortcut)


# --------------------------- layout / im2col glue ------------------------------

def nchw_to_cl(x, c_store):
    """(N,C,H,W) f32 -> channels-last (N,H,W,c_store) bf16, zero-padded lanes."""
    n, c, h, w = x.shape
    x = jnp.transpose(x, (0, 2, 3, 1)).astype(jnp.bfloat16)
    if c_store > c:
        x = jnp.pad(x, ((0, 0), (0, 0), (0, 0), (0, c_store - c)))
    return x


def cl_to_nchw(x_cl, c, oh, ow):
    """(N, OH*OW, Cp) bf16 -> (N, C, OH, OW) f32, dropping padded lanes."""
    n = x_cl.shape[0]
    x = x_cl[:, :, :c].reshape(n, oh, ow, c).astype(jnp.float32)
    return jnp.transpose(x, (0, 3, 1, 2))


def _im2col(x_cl, cin, kh, kw, stride, padding):
    """Compact-K channels-last im2col.

    x_cl:(N,H,W,Cstore) bf16 (only the first `cin` lanes are used)
    -> patches (N, OH*OW, Kp) bf16 with Kp = round_up(kh*kw*cin, 128), plus (OH, OW).
    K ordering is (kh, kw, cin), matching _prep_conv_w."""
    n, h, w, _ = x_cl.shape
    x = x_cl[..., :cin]
    oh = (h + 2 * padding - kh) // stride + 1
    ow = (w + 2 * padding - kw) // stride + 1
    xp = jnp.pad(x, ((0, 0), (padding, padding), (padding, padding), (0, 0)))
    cols = []
    for i in range(kh):
        for j in range(kw):
            cols.append(xp[:, i:i + stride * oh:stride, j:j + stride * ow:stride, :])
    col = jnp.concatenate(cols, axis=-1)                       # (N, OH, OW, kh*kw*cin)
    k_raw = kh * kw * cin
    k_p = _round_up(k_raw, 128)
    col = col.reshape(n, oh * ow, k_raw)
    if k_p > k_raw:
        col = jnp.pad(col, ((0, 0), (0, 0), (0, k_p - k_raw)))
    return col.astype(jnp.bfloat16), oh, ow


# ------------------------------ parameters -------------------------------------

def _prep_conv_w(w, cout_p):
    """Hoisted weight prep: PyTorch (Cout,Cin,kh,kw) f32 -> (Kp, Cout_p) bf16.
    K ordered (kh, kw, cin) and zero-padded once to a multiple of 128."""
    cout, cin, kh, kw = w.shape
    k_raw = kh * kw * cin
    k_p = _round_up(k_raw, 128)
    wp = jnp.transpose(w, (2, 3, 1, 0)).reshape(k_raw, cout)
    wp = jnp.pad(wp, ((0, k_p - k_raw), (0, cout_p - cout)))
    return wp.astype(jnp.bfloat16)


def make_block_params(key, in_planes, planes, stride):
    """Returns (kernel-ready params, raw PyTorch-layout params for the reference)."""
    k1, k2, k3 = jax.random.split(key, 3)
    cout_p = _round_up(planes, 128)

    def conv_init(k, cout, cin, ksz):
        kw_, kb_ = jax.random.split(k)
        bound = 1.0 / float(cin * ksz * ksz) ** 0.5
        w = jax.random.uniform(kw_, (cout, cin, ksz, ksz), jnp.float32, -bound, bound)
        b = jax.random.uniform(kb_, (cout,), jnp.float32, -bound, bound)
        return w, b

    raw = {"stride": stride}
    raw["c1_w"], raw["c1_b"] = conv_init(k1, planes, in_planes, 3)
    raw["c2_w"], raw["c2_b"] = conv_init(k2, planes, planes, 3)

    bp = {"stride": stride, "planes": planes, "in_planes": in_planes, "cout_p": cout_p}
    # Conv biases are mathematically cancelled by the immediately following
    # RemoveChannelMeanStd (mean subtraction), so the kernels omit them entirely.
    bp["w1"] = _prep_conv_w(raw["c1_w"], cout_p)
    bp["w2"] = _prep_conv_w(raw["c2_w"], cout_p)
    if stride != 1 or in_planes != planes:
        raw["sc_w"], raw["sc_b"] = conv_init(k3, planes, in_planes, 1)
        bp["wsc"] = _prep_conv_w(raw["sc_w"], cout_p)
    return bp, raw


# ------------------------------- Block forward ----------------------------------

def block_forward_cl(bp, x_cl):
    """Block.forward in padded channels-last bf16 form.

    x_cl: (N, H, W, Cstore) bf16 (Cstore >= in_planes; for the identity-shortcut
    variant Cstore must equal cout_p, with padded lanes zero).
    Returns (relu1_cl, out_cl, OH, OW) with shapes (N, OH*OW, cout_p) bf16.
    """
    n, h, w, _ = x_cl.shape
    s, planes, in_planes, cp = bp["stride"], bp["planes"], bp["in_planes"], bp["cout_p"]

    # conv1 + bn1 + relu (fused)
    patches1, oh, ow = _im2col(x_cl, in_planes, 3, 3, s, 1)
    relu1 = _conv_norm(patches1, bp["w1"], n_valid=planes, apply_relu=True)

    # shortcut path
    if "wsc" in bp:
        patches_sc, _, _ = _im2col(x_cl, in_planes, 1, 1, s, 0)
        shortcut = _conv_norm(patches_sc, bp["wsc"], n_valid=planes, apply_relu=False)
    else:
        assert x_cl.shape[-1] == cp, "identity shortcut needs cout_p lane-padded input"
        shortcut = x_cl.reshape(n, h * w, cp)          # identity (stride 1, in==out planes)

    # conv2 + bn2 + add shortcut + relu (fused)
    patches2, _, _ = _im2col(relu1.reshape(n, oh, ow, cp), planes, 3, 3, 1, 1)
    out = _conv_norm_add_relu(patches2, bp["w2"], shortcut, n_valid=planes)
    return relu1, out, oh, ow


def block_forward(bp, x):
    """Exact torch contract: x NCHW f32 -> (relu1, out) NCHW f32."""
    c_store = bp["in_planes"] if "wsc" in bp else bp["cout_p"]
    x_cl = nchw_to_cl(x, c_store)
    relu1_cl, out_cl, oh, ow = block_forward_cl(bp, x_cl)
    return (cl_to_nchw(relu1_cl, bp["planes"], oh, ow),
            cl_to_nchw(out_cl, bp["planes"], oh, ow))


# ------------------------------- pure-JAX reference -----------------------------

def _bf16_round(x):
    return x.astype(jnp.bfloat16).astype(jnp.float32)


def _ref_channel_norm(x):
    n, c, h, w = x.shape
    x2 = x.reshape(n, c, -1)
    mean = x2.mean(axis=2).reshape(n, c, 1, 1)
    std = jnp.std(x2, axis=2, ddof=1).reshape(n, c, 1, 1)
    return (x - mean) / std


def _ref_conv2d(x, w, b, stride, padding):
    # bf16 operands + f32 accumulation, mirroring the Pallas MXU path; bias kept
    # here (it is cancelled by the following normalization).
    y = jax.lax.conv_general_dilated(
        x.astype(jnp.bfloat16), w.astype(jnp.bfloat16),
        window_strides=(stride, stride),
        padding=[(padding, padding), (padding, padding)],
        dimension_numbers=("NCHW", "OIHW", "NCHW"),
        preferred_element_type=jnp.float32)
    return y + b.reshape(1, -1, 1, 1)


def _ref_block(raw, x):
    """Reference mirrors the kernel's bf16 activation-storage points so the
    comparison only measures structural / accumulation-order differences."""
    s = raw["stride"]
    out = _ref_conv2d(x, raw["c1_w"], raw["c1_b"], s, 1)
    relu1 = _bf16_round(jnp.maximum(_ref_channel_norm(out), 0.0))
    out = _ref_channel_norm(_ref_conv2d(relu1, raw["c2_w"], raw["c2_b"], 1, 1))
    if "sc_w" in raw:
        sc = _bf16_round(_ref_channel_norm(_ref_conv2d(x, raw["sc_w"], raw["sc_b"], s, 0)))
    else:
        sc = _bf16_round(x)
    return relu1, _bf16_round(jnp.maximum(out + sc, 0.0))


# ------------------------------------ main ---------------------------------------

if __name__ == "__main__":
    key = jax.random.PRNGKey(0)
    kx, ka, kb = jax.random.split(key, 3)

    N, CIN, H, W = 2, 4, 16, 16
    PLANES = 32

    # Block A: stride 2, in_planes != planes  -> exercises the 1x1-conv+norm shortcut.
    # Block B: stride 1, in_planes == planes  -> exercises the identity shortcut.
    params_a, raw_a = make_block_params(ka, CIN, PLANES, stride=2)
    params_b, raw_b = make_block_params(kb, PLANES, PLANES, stride=1)

    x = jax.random.normal(kx, (N, CIN, H, W), jnp.float32)

    def fwd(x):
        # Persistent padded channels-last bf16 layout across chained blocks.
        x_cl = nchw_to_cl(x, CIN)
        r1a_cl, outa_cl, oha, owa = block_forward_cl(params_a, x_cl)
        xb_cl = outa_cl.reshape(x.shape[0], oha, owa, params_a["cout_p"])
        r1b_cl, outb_cl, ohb, owb = block_forward_cl(params_b, xb_cl)
        return (cl_to_nchw(r1a_cl, PLANES, oha, owa),
                cl_to_nchw(outa_cl, PLANES, oha, owa),
                cl_to_nchw(r1b_cl, PLANES, ohb, owb),
                cl_to_nchw(outb_cl, PLANES, ohb, owb))

    r1a, outa, r1b, outb = jax.jit(fwd)(x)
    jax.block_until_ready((r1a, outa, r1b, outb))

    assert r1a.shape == (N, PLANES, 8, 8)
    assert outa.shape == (N, PLANES, 8, 8)
    assert r1b.shape == (N, PLANES, 8, 8)
    assert outb.shape == (N, PLANES, 8, 8)

    # Reference check (bf16 GEMM operands / bf16 activation storage mirrored on
    # both sides; tolerance covers rare 1-ulp bf16 rounding divergences).
    r1a_ref, outa_ref = _ref_block(raw_a, x)
    r1b_ref, outb_ref = _ref_block(raw_b, outa_ref)
    for name, got, ref in [("r1a", r1a, r1a_ref), ("outa", outa, outa_ref),
                           ("r1b", r1b, r1b_ref), ("outb", outb, outb_ref)]:
        assert bool(jnp.all(jnp.isfinite(got))), f"{name} has non-finite values"
        err = float(jnp.max(jnp.abs(got - ref)))
        assert err < 5e-2, f"{name}: max abs error {err}"

    print("KERNEL_OK")
</pallas_src>

<mosaic_0001>
module attributes {stable_mosaic.version = 11 : i64} {
  func.func @_conv_norm_kernel(%arg0: i32, %arg1: memref<1x64x128xbf16, #tpu.memory_space<vmem>>, %arg2: memref<128x128xbf16, #tpu.memory_space<vmem>>, %arg3: memref<1x64x128xbf16, #tpu.memory_space<vmem>>) attributes {dimension_semantics = [#tpu.dimension_semantics<parallel>], iteration_bounds = array<i64: 2>, scalar_prefetch = 0 : i64, scratch_operands = 0 : i64, tpu.core_type = #tpu.core_type<tc>, window_params = [{transform_indices = @transform_0, window_bounds = array<i64: 1, 64, 128>}, {pipeline_mode = #tpu.pipeline_mode<synchronous>, transform_indices = @transform_1, window_bounds = array<i64: 128, 128>}, {transform_indices = @transform_2, window_bounds = array<i64: 1, 64, 128>}]} {
    %c0 = arith.constant 0 : index
    %c0_0 = arith.constant 0 : index
    %c0_1 = arith.constant 0 : index
    %0 = vector.load %arg1[%c0, %c0_0, %c0_1] : memref<1x64x128xbf16, #tpu.memory_space<vmem>>, vector<1x64x128xbf16>
    %1 = vector.shape_cast %0 : vector<1x64x128xbf16> to vector<64x128xbf16>
    %c0_2 = arith.constant 0 : index
    %c0_3 = arith.constant 0 : index
    %2 = vector.load %arg2[%c0_2, %c0_3] : memref<128x128xbf16, #tpu.memory_space<vmem>>, vector<128x128xbf16>
    %cst = arith.constant dense<0.000000e+00> : vector<64x128xf32>
    %3 = tpu.matmul %1, %2, %cst {dimension_numbers = #tpu.dot_dimension_numbers<[1], [0], [0], [1], [0, 0, 1, 1], [], []>} : vector<64x128xbf16>, vector<128x128xbf16>, vector<64x128xf32> -> vector<64x128xf32>
    %4 = vector.shape_cast %3 : vector<64x128xf32> to vector<1x64x128xf32>
    %cst_4 = arith.constant dense<0.000000e+00> : vector<1x128xf32>
    %5 = vector.multi_reduction <add>, %4, %cst_4 [1] : vector<1x64x128xf32> to vector<1x128xf32>
    %6 = vector.shape_cast %5 : vector<1x128xf32> to vector<1x1x128xf32>
    %cst_5 = arith.constant 6.400000e+01 : f32
    %7 = vector.broadcast %cst_5 : f32 to vector<1x1x128xf32>
    %8 = arith.divf %6, %7 : vector<1x1x128xf32>
    %9 = vector.broadcast %8 : vector<1x1x128xf32> to vector<1x64x128xf32>
    %10 = arith.subf %4, %9 : vector<1x64x128xf32>
    %11 = arith.mulf %10, %10 : vector<1x64x128xf32>
    %cst_6 = arith.constant dense<0.000000e+00> : vector<1x128xf32>
    %12 = vector.multi_reduction <add>, %11, %cst_6 [1] : vector<1x64x128xf32> to vector<1x128xf32>
    %13 = vector.shape_cast %12 : vector<1x128xf32> to vector<1x1x128xf32>
    %cst_7 = arith.constant 0.0158730168 : f32
    %14 = vector.broadcast %cst_7 : f32 to vector<1x1x128xf32>
    %15 = arith.mulf %13, %14 : vector<1x1x128xf32>
    %16 = tpu.iota {dimensions = array<i32: 2>} : vector<1x1x128xi32>
    %c32_i32 = arith.constant 32 : i32
    %17 = vector.broadcast %c32_i32 : i32 to vector<1x1x128xi32>
    %18 = arith.cmpi slt, %16, %17 : vector<1x1x128xi32>
    %cst_8 = arith.constant 1.000000e+00 : f32
    %19 = vector.broadcast %cst_8 : f32 to vector<1x1x128xf32>
    %20 = arith.select %18, %15, %19 : vector<1x1x128xi1>, vector<1x1x128xf32>
    %21 = math.rsqrt %20 : vector<1x1x128xf32>
    %22 = vector.broadcast %21 : vector<1x1x128xf32> to vector<1x64x128xf32>
    %23 = arith.mulf %10, %22 : vector<1x64x128xf32>
    %cst_9 = arith.constant 0.000000e+00 : f32
    %24 = vector.broadcast %cst_9 : f32 to vector<1x64x128xf32>
    %25 = arith.maximumf %23, %24 : vector<1x64x128xf32>
    %26 = arith.truncf %25 : vector<1x64x128xf32> to vector<1x64x128xbf16>
    %c0_10 = arith.constant 0 : index
    %c0_11 = arith.constant 0 : index
    %c0_12 = arith.constant 0 : index
    %27 = vector.load %arg3[%c0_10, %c0_11, %c0_12] : memref<1x64x128xbf16, #tpu.memory_space<vmem>>, vector<1x64x128xbf16>
    tpu.vector_store %arg3[%c0_10, %c0_11, %c0_12], %26 {strides = array<i32>} : memref<1x64x128xbf16, #tpu.memory_space<vmem>>, vector<1x64x128xbf16>,
    return
  }
  func.func @transform_0(%arg0: i32) -> (i32, i32, i32) {
    %c0_i32 = arith.constant 0 : i32
    %c0_i32_0 = arith.constant 0 : i32
    %c0_i32_1 = arith.constant 0 : i32
    return %arg0, %c0_i32, %c0_i32_0 : i32, i32, i32
  }
  func.func @transform_1(%arg0: i32) -> (i32, i32) {
    %c0_i32 = arith.constant 0 : i32
    %c0_i32_0 = arith.constant 0 : i32
    %c0_i32_1 = arith.constant 0 : i32
    return %c0_i32, %c0_i32_0 : i32, i32
  }
  func.func @transform_2(%arg0: i32) -> (i32, i32, i32) {
    %c0_i32 = arith.constant 0 : i32
    %c0_i32_0 = arith.constant 0 : i32
    %c0_i32_1 = arith.constant 0 : i32
    return %arg0, %c0_i32, %c0_i32_0 : i32, i32, i32
  }
}

module attributes {stable_mosaic.version = 11 : i64} {
  func.func @_conv_norm_kernel(%arg0: i32, %arg1: memref<1x64x128xbf16, #tpu.memory_space<vmem>>, %arg2: memref<128x128xbf16, #tpu.memory_space<vmem>>, %arg3: memref<1x64x128xbf16, #tpu.memory_space<vmem>>) attributes {dimension_semantics = [#tpu.dimension_semantics<parallel>], iteration_bounds = array<i64: 2>, scalar_prefetch = 0 : i64, scratch_operands = 0 : i64, tpu.core_type = #tpu.core_type<tc>, window_params = [{transform_indices = @transform_0, window_bounds = array<i64: 1, 64, 128>}, {pipeline_mode = #tpu.pipeline_mode<synchronous>, transform_indices = @transform_1, window_bounds = array<i64: 128, 128>}, {transform_indices = @transform_2, window_bounds = array<i64: 1, 64, 128>}]} {
    %c0 = arith.constant 0 : index
    %c0_0 = arith.constant 0 : index
    %c0_1 = arith.constant 0 : index
    %0 = vector.load %arg1[%c0, %c0_0, %c0_1] : memref<1x64x128xbf16, #tpu.memory_space<vmem>>, vector<1x64x128xbf16>
    %1 = vector.shape_cast %0 : vector<1x64x128xbf16> to vector<64x128xbf16>
    %c0_2 = arith.constant 0 : index
    %c0_3 = arith.constant 0 : index
    %2 = vector.load %arg2[%c0_2, %c0_3] : memref<128x128xbf16, #tpu.memory_space<vmem>>, vector<128x128xbf16>
    %cst = arith.constant dense<0.000000e+00> : vector<64x128xf32>
    %3 = tpu.matmul %1, %2, %cst {dimension_numbers = #tpu.dot_dimension_numbers<[1], [0], [0], [1], [0, 0, 1, 1], [], []>} : vector<64x128xbf16>, vector<128x128xbf16>, vector<64x128xf32> -> vector<64x128xf32>
    %4 = vector.shape_cast %3 : vector<64x128xf32> to vector<1x64x128xf32>
    %cst_4 = arith.constant dense<0.000000e+00> : vector<1x128xf32>
    %5 = vector.multi_reduction <add>, %4, %cst_4 [1] : vector<1x64x128xf32> to vector<1x128xf32>
    %6 = vector.shape_cast %5 : vector<1x128xf32> to vector<1x1x128xf32>
    %cst_5 = arith.constant 6.400000e+01 : f32
    %7 = vector.broadcast %cst_5 : f32 to vector<1x1x128xf32>
    %8 = arith.divf %6, %7 : vector<1x1x128xf32>
    %9 = vector.broadcast %8 : vector<1x1x128xf32> to vector<1x64x128xf32>
    %10 = arith.subf %4, %9 : vector<1x64x128xf32>
    %11 = arith.mulf %10, %10 : vector<1x64x128xf32>
    %cst_6 = arith.constant dense<0.000000e+00> : vector<1x128xf32>
    %12 = vector.multi_reduction <add>, %11, %cst_6 [1] : vector<1x64x128xf32> to vector<1x128xf32>
    %13 = vector.shape_cast %12 : vector<1x128xf32> to vector<1x1x128xf32>
    %cst_7 = arith.constant 0.0158730168 : f32
    %14 = vector.broadcast %cst_7 : f32 to vector<1x1x128xf32>
    %15 = arith.mulf %13, %14 : vector<1x1x128xf32>
    %16 = tpu.iota {dimensions = array<i32: 2>} : vector<1x1x128xi32>
    %c32_i32 = arith.constant 32 : i32
    %17 = vector.broadcast %c32_i32 : i32 to vector<1x1x128xi32>
    %18 = arith.cmpi slt, %16, %17 : vector<1x1x128xi32>
    %cst_8 = arith.constant 1.000000e+00 : f32
    %19 = vector.broadcast %cst_8 : f32 to vector<1x1x128xf32>
    %20 = arith.select %18, %15, %19 : vector<1x1x128xi1>, vector<1x1x128xf32>
    %21 = math.rsqrt %20 : vector<1x1x128xf32>
    %22 = vector.broadcast %21 : vector<1x1x128xf32> to vector<1x64x128xf32>
    %23 = arith.mulf %10, %22 : vector<1x64x128xf32>
    %24 = arith.truncf %23 : vector<1x64x128xf32> to vector<1x64x128xbf16>
    %c0_9 = arith.constant 0 : index
    %c0_10 = arith.constant 0 : index
    %c0_11 = arith.constant 0 : index
    %25 = vector.load %arg3[%c0_9, %c0_10, %c0_11] : memref<1x64x128xbf16, #tpu.memory_space<vmem>>, vector<1x64x128xbf16>
    tpu.vector_store %arg3[%c0_9, %c0_10, %c0_11], %24 {strides = array<i32>} : memref<1x64x128xbf16, #tpu.memory_space<vmem>>, vector<1x64x128xbf16>,
    return
  }
  func.func @transform_0(%arg0: i32) -> (i32, i32, i32) {
    %c0_i32 = arith.constant 0 : i32
    %c0_i32_0 = arith.constant 0 : i32
    %c0_i32_1 = arith.constant 0 : i32
    return %arg0, %c0_i32, %c0_i32_0 : i32, i32, i32
  }
  func.func @transform_1(%arg0: i32) -> (i32, i32) {
    %c0_i32 = arith.constant 0 : i32
    %c0_i32_0 = arith.constant 0 : i32
    %c0_i32_1 = arith.constant 0 : i32
    return %c0_i32, %c0_i32_0 : i32, i32
  }
  func.func @transform_2(%arg0: i32) -> (i32, i32, i32) {
    %c0_i32 = arith.constant 0 : i32
    %c0_i32_0 = arith.constant 0 : i32
    %c0_i32_1 = arith.constant 0 : i32
    return %arg0, %c0_i32, %c0_i32_0 : i32, i32, i32
  }
}

module attributes {stable_mosaic.version = 11 : i64} {
  func.func @_conv_norm_kernel(%arg0: i32, %arg1: memref<1x64x384xbf16, #tpu.memory_space<vmem>>, %arg2: memref<384x128xbf16, #tpu.memory_space<vmem>>, %arg3: memref<1x64x128xbf16, #tpu.memory_space<vmem>>) attributes {dimension_semantics = [#tpu.dimension_semantics<parallel>], iteration_bounds = array<i64: 2>, scalar_prefetch = 0 : i64, scratch_operands = 0 : i64, tpu.core_type = #tpu.core_type<tc>, window_params = [{transform_indices = @transform_0, window_bounds = array<i64: 1, 64, 384>}, {pipeline_mode = #tpu.pipeline_mode<synchronous>, transform_indices = @transform_1, window_bounds = array<i64: 384, 128>}, {transform_indices = @transform_2, window_bounds = array<i64: 1, 64, 128>}]} {
    %c0 = arith.constant 0 : index
    %c0_0 = arith.constant 0 : index
    %c0_1 = arith.constant 0 : index
    %0 = vector.load %arg1[%c0, %c0_0, %c0_1] : memref<1x64x384xbf16, #tpu.memory_space<vmem>>, vector<1x64x384xbf16>
    %1 = vector.shape_cast %0 : vector<1x64x384xbf16> to vector<64x384xbf16>
    %c0_2 = arith.constant 0 : index
    %c0_3 = arith.constant 0 : index
    %2 = vector.load %arg2[%c0_2, %c0_3] : memref<384x128xbf16, #tpu.memory_space<vmem>>, vector<384x128xbf16>
    %cst = arith.constant dense<0.000000e+00> : vector<64x128xf32>
    %3 = tpu.matmul %1, %2, %cst {dimension_numbers = #tpu.dot_dimension_numbers<[1], [0], [0], [1], [0, 0, 1, 1], [], []>} : vector<64x384xbf16>, vector<384x128xbf16>, vector<64x128xf32> -> vector<64x128xf32>
    %4 = vector.shape_cast %3 : vector<64x128xf32> to vector<1x64x128xf32>
    %cst_4 = arith.constant dense<0.000000e+00> : vector<1x128xf32>
    %5 = vector.multi_reduction <add>, %4, %cst_4 [1] : vector<1x64x128xf32> to vector<1x128xf32>
    %6 = vector.shape_cast %5 : vector<1x128xf32> to vector<1x1x128xf32>
    %cst_5 = arith.constant 6.400000e+01 : f32
    %7 = vector.broadcast %cst_5 : f32 to vector<1x1x128xf32>
    %8 = arith.divf %6, %7 : vector<1x1x128xf32>
    %9 = vector.broadcast %8 : vector<1x1x128xf32> to vector<1x64x128xf32>
    %10 = arith.subf %4, %9 : vector<1x64x128xf32>
    %11 = arith.mulf %10, %10 : vector<1x64x128xf32>
    %cst_6 = arith.constant dense<0.000000e+00> : vector<1x128xf32>
    %12 = vector.multi_reduction <add>, %11, %cst_6 [1] : vector<1x64x128xf32> to vector<1x128xf32>
    %13 = vector.shape_cast %12 : vector<1x128xf32> to vector<1x1x128xf32>
    %cst_7 = arith.constant 0.0158730168 : f32
    %14 = vector.broadcast %cst_7 : f32 to vector<1x1x128xf32>
    %15 = arith.mulf %13, %14 : vector<1x1x128xf32>
    %16 = tpu.iota {dimensions = array<i32: 2>} : vector<1x1x128xi32>
    %c32_i32 = arith.constant 32 : i32
    %17 = vector.broadcast %c32_i32 : i32 to vector<1x1x128xi32>
    %18 = arith.cmpi slt, %16, %17 : vector<1x1x128xi32>
    %cst_8 = arith.constant 1.000000e+00 : f32
    %19 = vector.broadcast %cst_8 : f32 to vector<1x1x128xf32>
    %20 = arith.select %18, %15, %19 : vector<1x1x128xi1>, vector<1x1x128xf32>
    %21 = math.rsqrt %20 : vector<1x1x128xf32>
    %22 = vector.broadcast %21 : vector<1x1x128xf32> to vector<1x64x128xf32>
    %23 = arith.mulf %10, %22 : vector<1x64x128xf32>
    %cst_9 = arith.constant 0.000000e+00 : f32
    %24 = vector.broadcast %cst_9 : f32 to vector<1x64x128xf32>
    %25 = arith.maximumf %23, %24 : vector<1x64x128xf32>
    %26 = arith.truncf %25 : vector<1x64x128xf32> to vector<1x64x128xbf16>
    %c0_10 = arith.constant 0 : index
    %c0_11 = arith.constant 0 : index
    %c0_12 = arith.constant 0 : index
    %27 = vector.load %arg3[%c0_10, %c0_11, %c0_12] : memref<1x64x128xbf16, #tpu.memory_space<vmem>>, vector<1x64x128xbf16>
    tpu.vector_store %arg3[%c0_10, %c0_11, %c0_12], %26 {strides = array<i32>} : memref<1x64x128xbf16, #tpu.memory_space<vmem>>, vector<1x64x128xbf16>,
    return
  }
  func.func @transform_0(%arg0: i32) -> (i32, i32, i32) {
    %c0_i32 = arith.constant 0 : i32
    %c0_i32_0 = arith.constant 0 : i32
    %c0_i32_1 = arith.constant 0 : i32
    return %arg0, %c0_i32, %c0_i32_0 : i32, i32, i32
  }
  func.func @transform_1(%arg0: i32) -> (i32, i32) {
    %c0_i32 = arith.constant 0 : i32
    %c0_i32_0 = arith.constant 0 : i32
    %c0_i32_1 = arith.constant 0 : i32
    return %c0_i32, %c0_i32_0 : i32, i32
  }
  func.func @transform_2(%arg0: i32) -> (i32, i32, i32) {
    %c0_i32 = arith.constant 0 : i32
    %c0_i32_0 = arith.constant 0 : i32
    %c0_i32_1 = arith.constant 0 : i32
    return %arg0, %c0_i32, %c0_i32_0 : i32, i32, i32
  }
}

module attributes {stable_mosaic.version = 11 : i64} {
  func.func @_conv_norm_add_relu_kernel(%arg0: i32, %arg1: memref<1x64x384xbf16, #tpu.memory_space<vmem>>, %arg2: memref<384x128xbf16, #tpu.memory_space<vmem>>, %arg3: memref<1x64x128xbf16, #tpu.memory_space<vmem>>, %arg4: memref<1x64x128xbf16, #tpu.memory_space<vmem>>) attributes {dimension_semantics = [#tpu.dimension_semantics<parallel>], iteration_bounds = array<i64: 2>, scalar_prefetch = 0 : i64, scratch_operands = 0 : i64, tpu.core_type = #tpu.core_type<tc>, window_params = [{transform_indices = @transform_0, window_bounds = array<i64: 1, 64, 384>}, {pipeline_mode = #tpu.pipeline_mode<synchronous>, transform_indices = @transform_1, window_bounds = array<i64: 384, 128>}, {transform_indices = @transform_2, window_bounds = array<i64: 1, 64, 128>}, {transform_indices = @transform_3, window_bounds = array<i64: 1, 64, 128>}]} {
    %c0 = arith.constant 0 : index
    %c0_0 = arith.constant 0 : index
    %c0_1 = arith.constant 0 : index
    %0 = vector.load %arg1[%c0, %c0_0, %c0_1] : memref<1x64x384xbf16, #tpu.memory_space<vmem>>, vector<1x64x384xbf16>
    %1 = vector.shape_cast %0 : vector<1x64x384xbf16> to vector<64x384xbf16>
    %c0_2 = arith.constant 0 : index
    %c0_3 = arith.constant 0 : index
    %2 = vector.load %arg2[%c0_2, %c0_3] : memref<384x128xbf16, #tpu.memory_space<vmem>>, vector<384x128xbf16>
    %cst = arith.constant dense<0.000000e+00> : vector<64x128xf32>
    %3 = tpu.matmul %1, %2, %cst {dimension_numbers = #tpu.dot_dimension_numbers<[1], [0], [0], [1], [0, 0, 1, 1], [], []>} : vector<64x384xbf16>, vector<384x128xbf16>, vector<64x128xf32> -> vector<64x128xf32>
    %4 = vector.shape_cast %3 : vector<64x128xf32> to vector<1x64x128xf32>
    %cst_4 = arith.constant dense<0.000000e+00> : vector<1x128xf32>
    %5 = vector.multi_reduction <add>, %4, %cst_4 [1] : vector<1x64x128xf32> to vector<1x128xf32>
    %6 = vector.shape_cast %5 : vector<1x128xf32> to vector<1x1x128xf32>
    %cst_5 = arith.constant 6.400000e+01 : f32
    %7 = vector.broadcast %cst_5 : f32 to vector<1x1x128xf32>
    %8 = arith.divf %6, %7 : vector<1x1x128xf32>
    %9 = vector.broadcast %8 : vector<1x1x128xf32> to vector<1x64x128xf32>
    %10 = arith.subf %4, %9 : vector<1x64x128xf32>
    %11 = arith.mulf %10, %10 : vector<1x64x128xf32>
    %cst_6 = arith.constant dense<0.000000e+00> : vector<1x128xf32>
    %12 = vector.multi_reduction <add>, %11, %cst_6 [1] : vector<1x64x128xf32> to vector<1x128xf32>
    %13 = vector.shape_cast %12 : vector<1x128xf32> to vector<1x1x128xf32>
    %cst_7 = arith.constant 0.0158730168 : f32
    %14 = vector.broadcast %cst_7 : f32 to vector<1x1x128xf32>
    %15 = arith.mulf %13, %14 : vector<1x1x128xf32>
    %16 = tpu.iota {dimensions = array<i32: 2>} : vector<1x1x128xi32>
    %c32_i32 = arith.constant 32 : i32
    %17 = vector.broadcast %c32_i32 : i32 to vector<1x1x128xi32>
    %18 = arith.cmpi slt, %16, %17 : vector<1x1x128xi32>
    %cst_8 = arith.constant 1.000000e+00 : f32
    %19 = vector.broadcast %cst_8 : f32 to vector<1x1x128xf32>
    %20 = arith.select %18, %15, %19 : vector<1x1x128xi1>, vector<1x1x128xf32>
    %21 = math.rsqrt %20 : vector<1x1x128xf32>
    %22 = vector.broadcast %21 : vector<1x1x128xf32> to vector<1x64x128xf32>
    %23 = arith.mulf %10, %22 : vector<1x64x128xf32>
    %c0_9 = arith.constant 0 : index
    %c0_10 = arith.constant 0 : index
    %c0_11 = arith.constant 0 : index
    %24 = vector.load %arg3[%c0_9, %c0_10, %c0_11] : memref<1x64x128xbf16, #tpu.memory_space<vmem>>, vector<1x64x128xbf16>
    %25 = arith.extf %24 : vector<1x64x128xbf16> to vector<1x64x128xf32>
    %26 = arith.addf %23, %25 : vector<1x64x128xf32>
    %cst_12 = arith.constant 0.000000e+00 : f32
    %27 = vector.broadcast %cst_12 : f32 to vector<1x64x128xf32>
    %28 = arith.maximumf %26, %27 : vector<1x64x128xf32>
    %29 = arith.truncf %28 : vector<1x64x128xf32> to vector<1x64x128xbf16>
    %c0_13 = arith.constant 0 : index
    %c0_14 = arith.constant 0 : index
    %c0_15 = arith.constant 0 : index
    %30 = vector.load %arg4[%c0_13, %c0_14, %c0_15] : memref<1x64x128xbf16, #tpu.memory_space<vmem>>, vector<1x64x128xbf16>
    tpu.vector_store %arg4[%c0_13, %c0_14, %c0_15], %29 {strides = array<i32>} : memref<1x64x128xbf16, #tpu.memory_space<vmem>>, vector<1x64x128xbf16>,
    return
  }
  func.func @transform_0(%arg0: i32) -> (i32, i32, i32) {
    %c0_i32 = arith.constant 0 : i32
    %c0_i32_0 = arith.constant 0 : i32
    %c0_i32_1 = arith.constant 0 : i32
    return %arg0, %c0_i32, %c0_i32_0 : i32, i32, i32
  }
  func.func @transform_1(%arg0: i32) -> (i32, i32) {
    %c0_i32 = arith.constant 0 : i32
    %c0_i32_0 = arith.constant 0 : i32
    %c0_i32_1 = arith.constant 0 : i32
    return %c0_i32, %c0_i32_0 : i32, i32
  }
  func.func @transform_2(%arg0: i32) -> (i32, i32, i32) {
    %c0_i32 = arith.constant 0 : i32
    %c0_i32_0 = arith.constant 0 : i32
    %c0_i32_1 = arith.constant 0 : i32
    return %arg0, %c0_i32, %c0_i32_0 : i32, i32, i32
  }
  func.func @transform_3(%arg0: i32) -> (i32, i32, i32) {
    %c0_i32 = arith.constant 0 : i32
    %c0_i32_0 = arith.constant 0 : i32
    %c0_i32_1 = arith.constant 0 : i32
    return %arg0, %c0_i32, %c0_i32_0 : i32, i32, i32
  }
}

</mosaic_0001>

<bundles_post_ra>
// kernel: fwd.5
= control target key start
LH: loop header
LB: loop body
LE: loop exit
PB: predicated region body
PF: predicated region fallthrough
CT: control target
= control target key end

     0   :  { %s628_s9 = smov 0   ;;  %s682_s0 = inlined_call_operand.vmem [shape: bf16[2,64,128], index: 0, kind: input, shape index: {}]   ;;  %s683_s1 = inlined_call_operand.vmem [shape: bf16[128,128], index: 1, kind: input, shape index: {}]   ;;  %s684_s2 = inlined_call_operand.vmem [shape: bf16[2,64,128], index: 2, kind: output, shape index: {}]  }
   0x1 LB: > { %s467_s10 = sadd.s32 4294967295, %s611_s9   ;;  %p471_p0 = scmp.ge.s32.totalorder %s611_s9, 1  ;;  %s611_s9 = sphi %s628_s9, %s12_s9  }
   0x2   : > { %p112_p1 = scmp.lt.s32.totalorder %s611_s9, 3 }
   0x4   : > { %p113_p2 = pnand %p471_p0, %p112_p1 }
   0x5   : > { %v591_v0 = vld [vmem:[%s683_s1] sm:$0xff] (!%p113_p2)   ;;  %p134_p3 = scmp.lt.s32.totalorder (!%p113_p2), %s467_s10, 1  ;;  %v592_v1 = vld [vmem:[%s683_s1 + $0x8] sm:$0xff] (!%p113_p2)   ;;  %v593_v2 = vld [vmem:[%s683_s1 + $0x10] sm:$0xff] (!%p113_p2)   ;;  %v351_v59 = vlaneseq (!%p113_p2) }
   0x6   : > { %116 = sbr.rel (%p113_p2) target bundleno = 333 (0x14d), region = 28  ;;  %543 = vmatprep.subr.bf16.mxu0 (!%p113_p2), %v591_v0  ;;  %567 = vmatprep.subr.bf16.mxu1 (!%p113_p2), %v591_v0  ;;  %v594_v3 = vld [vmem:[%s683_s1 + $0x18] sm:$0xff] (!%p113_p2)   ;;  %v595_v6 = vld [vmem:[%s683_s1 + $0x20] sm:$0xff] (!%p113_p2)   ;;  %v596_v7 = vld [vmem:[%s683_s1 + $0x28] sm:$0xff] (!%p113_p2)  }
   0x7   : > { %544 = vmatpush3.bf16.msra.mxu0 (!%p113_p2), %v591_v0  ;;  %575 = vmatpush3.bf16.msra.mxu1 (!%p113_p2), %v591_v0  ;;  %v597_v8 = vld [vmem:[%s683_s1 + $0x30] sm:$0xff] (!%p113_p2)   ;;  %v598_v9 = vld [vmem:[%s683_s1 + $0x38] sm:$0xff] (!%p113_p2)   ;;  %v352_v62 = vand.u32 (!%p113_p2), 127, %v351_v59 }
   0x8   : > { %545 = vmatprep.subr.bf16.mxu0 (!%p113_p2), %v592_v1  ;;  %568 = vmatprep.subr.bf16.mxu1 (!%p113_p2), %v592_v1 }
   0x9   : > { %vm353_vm0 = vcmp.lt.s32.totalorder (!%p113_p2), %v352_v62, 32 }
   0xb   : > { %546 = vmatpush3.bf16.msra.mxu0 (!%p113_p2), %v592_v1  ;;  %576 = vmatpush3.bf16.msra.mxu1 (!%p113_p2), %v592_v1 }
   0xc   : > { %547 = vmatprep.subr.bf16.mxu0 (!%p113_p2), %v593_v2  ;;  %569 = vmatprep.subr.bf16.mxu1 (!%p113_p2), %v593_v2 }
   0xd   : > { %s686_s10 = smov (!%p134_p3, %s467_s10), 1 }
   0xe   : > { %s498_s17 = sshll.u32 %s686_s10, 5 }
   0xf   : > { %s653_s20 = scalar_lea.vmem %s682_s0, %s498_s17  ;;  %548 = vmatpush3.bf16.msra.mxu0 %v593_v2  ;;  %577 = vmatpush3.bf16.msra.mxu1 %v593_v2  ;;  %s143_s5 = scalar_lea.vmem %s684_s2, %s498_s17 }
  0x10   : > { %v599_v4 = vld [vmem:[%s653_s20] sm:$0xff]   ;;  %v601_v5 = vld [vmem:[%s653_s20 + $0x10] sm:$0xff]   ;;  %549 = vmatprep.subr.bf16.mxu0 %v594_v3  ;;  %570 = vmatprep.subr.bf16.mxu1 %v594_v3  ;;  %v600_v10 = vld [vmem:[%s653_s20 + $0x8] sm:$0xff]  }
  0x11   : > { %559 = vmatprep.mubr.bf16.mxu0 %v599_v4  ;;  %563 = vmatprep.mubr.bf16.mxu1 %v601_v5  ;;  %v602_v11 = vld [vmem:[%s653_s20 + $0x18] sm:$0xff]  }
  0x13   : > { %550 = vmatpush3.bf16.msra.mxu0 %v594_v3  ;;  %578 = vmatpush3.bf16.msra.mxu1 %v594_v3 }
  0x14   : > { %551 = vmatprep.subr.bf16.mxu0 %v595_v6  ;;  %571 = vmatprep.subr.bf16.mxu1 %v595_v6 }
  0x17   : > { %552 = vmatpush3.bf16.msra.mxu0 %v595_v6  ;;  %579 = vmatpush3.bf16.msra.mxu1 %v595_v6 }
  0x18   : > { %553 = vmatprep.subr.bf16.mxu0 %v596_v7  ;;  %572 = vmatprep.subr.bf16.mxu1 %v596_v7 }
  0x1b   : > { %554 = vmatpush3.bf16.msra.mxu0 %v596_v7  ;;  %580 = vmatpush3.bf16.msra.mxu1 %v596_v7 }
  0x1c   : > { %555 = vmatprep.subr.bf16.mxu0 %v597_v8  ;;  %573 = vmatprep.subr.bf16.mxu1 %v597_v8 }
  0x1f   : > { %556 = vmatpush3.bf16.msra.mxu0 %v597_v8  ;;  %581 = vmatpush3.bf16.msra.mxu1 %v597_v8 }
  0x20   : > { %557 = vmatprep.subr.bf16.mxu0 %v598_v9  ;;  %574 = vmatprep.subr.bf16.mxu1 %v598_v9 }
  0x23   : > { %558 = vmatpush3.bf16.msra.mxu0 %v598_v9  ;;  %582 = vmatpush3.bf16.msra.mxu1 %v598_v9 }
  0x26   : > { %560 = vmatmul.mubr.bf16.vlgmr.msra.gmra.mrb[0].mxu0 %v600_v10  ;;  %564 = vmatmul.mubr.bf16.vlgmr.msra.gmra.mrb[0].mxu1 %v602_v11 }
  0xf9   : > { %v561_v12 = vpop.f32.mrb[0].mxu0  ;;  %v565_v13 = vpop.f32.mrb[0].mxu1 }
  0xfa   : > { %v275_v14 = vpop.f32.mrb[1].mxu0  ;;  %v291_v15 = vpop.f32.mrb[1].mxu1 }
  0xfb   : > { %v562_v16 = vpop.f32.mrb[2].mxu0  ;;  %v566_v17 = vpop.f32.mrb[2].mxu1 }
  0xfc   : > { %v278_v18 = vpop.f32.mrb[3].mxu0  ;;  %v294_v19 = vpop.f32.mrb[3].mxu1 }
  0xfd   : > { %v306_v20 = vadd.f32 %v278_v18, %v275_v14 }
  0xff   : > { %v307_v21 = vadd.f32 %v561_v12, %v306_v20 }
 0x101   : > { %v308_v22 = vadd.f32 %v562_v16, %v307_v21 }
 0x103   : > { %v309_v23 = vadd.f32 %v308_v22, %v291_v15 }
 0x105   : > { %v310_v24 = vadd.f32 %v309_v23, %v294_v19 }
 0x107   : > { %v311_v25 = vadd.f32 %v565_v13, %v310_v24 }
 0x109   : > { %v312_v26 = vadd.f32 %v566_v17, %v311_v25 }
 0x10b   : > { %v313_v27 = vrot.slane %v312_v26, 4 }
 0x10d   : > { %v314_v28 = vadd.f32 %v313_v27, %v312_v26 }
 0x10f   : > { %v315_v29 = vrot.slane %v314_v28, 2 }
 0x111   : > { %v316_v30 = vadd.f32 %v315_v29, %v314_v28 }
 0x113   : > { %v317_v31 = vrot.slane %v316_v30, 1 }
 0x115   : > { %v318_v32 = vadd.f32 %v317_v31, %v316_v30 }
 0x117   : > { %v320_v33 = vmul.f32 0.015625, %v318_v32 }
 0x119   : > { %v321_v34 = vsub.f32 %v275_v14, %v320_v33  ;;  %v322_v35 = vsub.f32 %v278_v18, %v320_v33  ;;  %v323_v36 = vsub.f32 %v561_v12, %v320_v33  ;;  %v324_v37 = vsub.f32 %v562_v16, %v320_v33 }
 0x11a   : > { %v325_v38 = vsub.f32 %v291_v15, %v320_v33  ;;  %v326_v39 = vsub.f32 %v294_v19, %v320_v33  ;;  %v327_v40 = vsub.f32 %v565_v13, %v320_v33  ;;  %v328_v41 = vsub.f32 %v566_v17, %v320_v33 }
 0x11b   : > { %v329_v42 = vmul.f32 %v321_v34, %v321_v34  ;;  %v330_v43 = vmul.f32 %v322_v35, %v322_v35  ;;  %v331_v44 = vmul.f32 %v323_v36, %v323_v36  ;;  %v332_v46 = vmul.f32 %v324_v37, %v324_v37 }
 0x11c   : > { %v333_v48 = vmul.f32 %v325_v38, %v325_v38  ;;  %v334_v50 = vmul.f32 %v326_v39, %v326_v39  ;;  %v335_v52 = vmul.f32 %v327_v40, %v327_v40  ;;  %v336_v54 = vmul.f32 %v328_v41, %v328_v41 }
 0x11d   : > { %v337_v45 = vadd.f32 %v330_v43, %v329_v42 }
 0x11f   : > { %v338_v47 = vadd.f32 %v337_v45, %v331_v44 }
 0x121   : > { %v339_v49 = vadd.f32 %v338_v47, %v332_v46 }
 0x123   : > { %v340_v51 = vadd.f32 %v339_v49, %v333_v48 }
 0x125   : > { %v341_v53 = vadd.f32 %v340_v51, %v334_v50 }
 0x127   : > { %v342_v55 = vadd.f32 %v341_v53, %v335_v52 }
 0x129   : > { %v343_v56 = vadd.f32 %v342_v55, %v336_v54 }
 0x12b   : > { %v344_v57 = vrot.slane %v343_v56, 4 }
 0x12d   : > { %v345_v58 = vadd.f32 %v344_v57, %v343_v56 }
 0x12f   : > { %v346_v60 = vrot.slane %v345_v58, 2 }
 0x131   : > { %v347_v61 = vadd.f32 %v346_v60, %v345_v58 }
 0x133   : > { %v348_v63 = vrot.slane %v347_v61, 1 }
 0x135   : > { %v349_v0 = vadd.f32 %v348_v63, %v347_v61 }
 0x137   : > { %v350_v1 = vmul.f32 0.015873017, %v349_v0 }
 0x139   : > { %v354_v2 = vsel %vm353_vm0, %v350_v1, 1.0 }
 0x13a   : > { %603 = vrsqrt.f32 %v354_v2 }
 0x144   : > { %v604_v3 = vpop.eup %603 }
 0x145   : > { %v356_v4 = vmul.f32 %v604_v3, %v321_v34  ;;  %v357_v5 = vmul.f32 %v604_v3, %v322_v35  ;;  %v358_v6 = vmul.f32 %v604_v3, %v323_v36  ;;  %v359_v7 = vmul.f32 %v604_v3, %v324_v37 }
 0x146   : > { %v360_v8 = vmul.f32 %v604_v3, %v325_v38  ;;  %v361_v9 = vmul.f32 %v604_v3, %v326_v39  ;;  %v362_v10 = vmul.f32 %v604_v3, %v327_v40  ;;  %v363_v11 = vmul.f32 %v604_v3, %v328_v41 }
 0x147   : > { %v364_v12 = vmax.f32 %v356_v4, 0.0  ;;  %v365_v13 = vmax.f32 %v357_v5, 0.0  ;;  %v366_v14 = vmax.f32 %v358_v6, 0.0  ;;  %v367_v15 = vmax.f32 %v359_v7, 0.0 }
 0x148   : > { %v368_v16 = vmax.f32 %v360_v8, 0.0  ;;  %v369_v17 = vmax.f32 %v361_v9, 0.0  ;;  %v370_v18 = vmax.f32 %v362_v10, 0.0  ;;  %v371_v19 = vmax.f32 %v363_v11, 0.0 }
 0x149   : > { %v511_v20 = vpack.c.bf16 %v365_v13, %v364_v12  ;;  %v516_v21 = vpack.c.bf16 %v367_v15, %v366_v14 }
 0x14a   : > { %v521_v22 = vpack.c.bf16 %v369_v17, %v368_v16  ;;  %v526_v23 = vpack.c.bf16 %v371_v19, %v370_v18 }
 0x14b   : > { %512 = vst [vmem:[%s143_s5] sm:$0xff] %v511_v20   ;;  %528 = vst [vmem:[%s143_s5 + $0x8] sm:$0xff] %v516_v21  }
 0x14c   : > { %529 = vst [vmem:[%s143_s5 + $0x10] sm:$0xff] %v521_v22   ;;  %530 = vst [vmem:[%s143_s5 + $0x18] sm:$0xff] %v526_v23  }
 0x14d PF: > { %s12_s9 = sadd.s32 1, %s611_s9  }
 0x14e   : > { %p9_p4 = scmp.ge.s32.totalorder %s12_s9, 4  }
 0x150   :  { %11 = sbr.rel (!%p9_p4) target bundleno = 1 (0x1), region = 58 }

// kernel: fwd.6
= control target key start
LH: loop header
LB: loop body
LE: loop exit
PB: predicated region body
PF: predicated region fallthrough
CT: control target
= control target key end

     0   :  { %s620_s9 = smov 0   ;;  %s674_s0 = inlined_call_operand.vmem [shape: bf16[2,64,128], index: 0, kind: input, shape index: {}]   ;;  %s675_s1 = inlined_call_operand.vmem [shape: bf16[128,128], index: 1, kind: input, shape index: {}]   ;;  %s676_s2 = inlined_call_operand.vmem [shape: bf16[2,64,128], index: 2, kind: output, shape index: {}]  }
   0x1 LB: > { %s459_s10 = sadd.s32 4294967295, %s603_s9   ;;  %p463_p0 = scmp.ge.s32.totalorder %s603_s9, 1  ;;  %s603_s9 = sphi %s620_s9, %s12_s9  }
   0x2   : > { %p112_p1 = scmp.lt.s32.totalorder %s603_s9, 3 }
   0x4   : > { %p113_p2 = pnand %p463_p0, %p112_p1 }
   0x5   : > { %v583_v0 = vld [vmem:[%s675_s1] sm:$0xff] (!%p113_p2)   ;;  %p134_p3 = scmp.lt.s32.totalorder (!%p113_p2), %s459_s10, 1  ;;  %v584_v1 = vld [vmem:[%s675_s1 + $0x8] sm:$0xff] (!%p113_p2)   ;;  %v585_v2 = vld [vmem:[%s675_s1 + $0x10] sm:$0xff] (!%p113_p2)   ;;  %v351_v59 = vlaneseq (!%p113_p2) }
   0x6   : > { %116 = sbr.rel (%p113_p2) target bundleno = 331 (0x14b), region = 28  ;;  %535 = vmatprep.subr.bf16.mxu0 (!%p113_p2), %v583_v0  ;;  %559 = vmatprep.subr.bf16.mxu1 (!%p113_p2), %v583_v0  ;;  %v586_v3 = vld [vmem:[%s675_s1 + $0x18] sm:$0xff] (!%p113_p2)   ;;  %v587_v6 = vld [vmem:[%s675_s1 + $0x20] sm:$0xff] (!%p113_p2)   ;;  %v588_v7 = vld [vmem:[%s675_s1 + $0x28] sm:$0xff] (!%p113_p2)  }
   0x7   : > { %536 = vmatpush3.bf16.msra.mxu0 (!%p113_p2), %v583_v0  ;;  %567 = vmatpush3.bf16.msra.mxu1 (!%p113_p2), %v583_v0  ;;  %v589_v8 = vld [vmem:[%s675_s1 + $0x30] sm:$0xff] (!%p113_p2)   ;;  %v590_v9 = vld [vmem:[%s675_s1 + $0x38] sm:$0xff] (!%p113_p2)   ;;  %v352_v62 = vand.u32 (!%p113_p2), 127, %v351_v59 }
   0x8   : > { %537 = vmatprep.subr.bf16.mxu0 (!%p113_p2), %v584_v1  ;;  %560 = vmatprep.subr.bf16.mxu1 (!%p113_p2), %v584_v1 }
   0x9   : > { %vm353_vm0 = vcmp.lt.s32.totalorder (!%p113_p2), %v352_v62, 32 }
   0xb   : > { %538 = vmatpush3.bf16.msra.mxu0 (!%p113_p2), %v584_v1  ;;  %568 = vmatpush3.bf16.msra.mxu1 (!%p113_p2), %v584_v1 }
   0xc   : > { %539 = vmatprep.subr.bf16.mxu0 (!%p113_p2), %v585_v2  ;;  %561 = vmatprep.subr.bf16.mxu1 (!%p113_p2), %v585_v2 }
   0xd   : > { %s678_s10 = smov (!%p134_p3, %s459_s10), 1 }
   0xe   : > { %s490_s17 = sshll.u32 %s678_s10, 5 }
   0xf   : > { %s645_s20 = scalar_lea.vmem %s674_s0, %s490_s17  ;;  %540 = vmatpush3.bf16.msra.mxu0 %v585_v2  ;;  %569 = vmatpush3.bf16.msra.mxu1 %v585_v2  ;;  %s143_s5 = scalar_lea.vmem %s676_s2, %s490_s17 }
  0x10   : > { %v591_v4 = vld [vmem:[%s645_s20] sm:$0xff]   ;;  %v593_v5 = vld [vmem:[%s645_s20 + $0x10] sm:$0xff]   ;;  %541 = vmatprep.subr.bf16.mxu0 %v586_v3  ;;  %562 = vmatprep.subr.bf16.mxu1 %v586_v3  ;;  %v592_v10 = vld [vmem:[%s645_s20 + $0x8] sm:$0xff]  }
  0x11   : > { %551 = vmatprep.mubr.bf16.mxu0 %v591_v4  ;;  %555 = vmatprep.mubr.bf16.mxu1 %v593_v5  ;;  %v594_v11 = vld [vmem:[%s645_s20 + $0x18] sm:$0xff]  }
  0x13   : > { %542 = vmatpush3.bf16.msra.mxu0 %v586_v3  ;;  %570 = vmatpush3.bf16.msra.mxu1 %v586_v3 }
  0x14   : > { %543 = vmatprep.subr.bf16.mxu0 %v587_v6  ;;  %563 = vmatprep.subr.bf16.mxu1 %v587_v6 }
  0x17   : > { %544 = vmatpush3.bf16.msra.mxu0 %v587_v6  ;;  %571 = vmatpush3.bf16.msra.mxu1 %v587_v6 }
  0x18   : > { %545 = vmatprep.subr.bf16.mxu0 %v588_v7  ;;  %564 = vmatprep.subr.bf16.mxu1 %v588_v7 }
  0x1b   : > { %546 = vmatpush3.bf16.msra.mxu0 %v588_v7  ;;  %572 = vmatpush3.bf16.msra.mxu1 %v588_v7 }
  0x1c   : > { %547 = vmatprep.subr.bf16.mxu0 %v589_v8  ;;  %565 = vmatprep.subr.bf16.mxu1 %v589_v8 }
  0x1f   : > { %548 = vmatpush3.bf16.msra.mxu0 %v589_v8  ;;  %573 = vmatpush3.bf16.msra.mxu1 %v589_v8 }
  0x20   : > { %549 = vmatprep.subr.bf16.mxu0 %v590_v9  ;;  %566 = vmatprep.subr.bf16.mxu1 %v590_v9 }
  0x23   : > { %550 = vmatpush3.bf16.msra.mxu0 %v590_v9  ;;  %574 = vmatpush3.bf16.msra.mxu1 %v590_v9 }
  0x26   : > { %552 = vmatmul.mubr.bf16.vlgmr.msra.gmra.mrb[0].mxu0 %v592_v10  ;;  %556 = vmatmul.mubr.bf16.vlgmr.msra.gmra.mrb[0].mxu1 %v594_v11 }
  0xf9   : > { %v553_v12 = vpop.f32.mrb[0].mxu0  ;;  %v557_v13 = vpop.f32.mrb[0].mxu1 }
  0xfa   : > { %v275_v14 = vpop.f32.mrb[1].mxu0  ;;  %v291_v15 = vpop.f32.mrb[1].mxu1 }
  0xfb   : > { %v554_v16 = vpop.f32.mrb[2].mxu0  ;;  %v558_v17 = vpop.f32.mrb[2].mxu1 }
  0xfc   : > { %v278_v18 = vpop.f32.mrb[3].mxu0  ;;  %v294_v19 = vpop.f32.mrb[3].mxu1 }
  0xfd   : > { %v306_v20 = vadd.f32 %v278_v18, %v275_v14 }
  0xff   : > { %v307_v21 = vadd.f32 %v553_v12, %v306_v20 }
 0x101   : > { %v308_v22 = vadd.f32 %v554_v16, %v307_v21 }
 0x103   : > { %v309_v23 = vadd.f32 %v308_v22, %v291_v15 }
 0x105   : > { %v310_v24 = vadd.f32 %v309_v23, %v294_v19 }
 0x107   : > { %v311_v25 = vadd.f32 %v557_v13, %v310_v24 }
 0x109   : > { %v312_v26 = vadd.f32 %v558_v17, %v311_v25 }
 0x10b   : > { %v313_v27 = vrot.slane %v312_v26, 4 }
 0x10d   : > { %v314_v28 = vadd.f32 %v313_v27, %v312_v26 }
 0x10f   : > { %v315_v29 = vrot.slane %v314_v28, 2 }
 0x111   : > { %v316_v30 = vadd.f32 %v315_v29, %v314_v28 }
 0x113   : > { %v317_v31 = vrot.slane %v316_v30, 1 }
 0x115   : > { %v318_v32 = vadd.f32 %v317_v31, %v316_v30 }
 0x117   : > { %v320_v33 = vmul.f32 0.015625, %v318_v32 }
 0x119   : > { %v321_v34 = vsub.f32 %v275_v14, %v320_v33  ;;  %v322_v35 = vsub.f32 %v278_v18, %v320_v33  ;;  %v323_v36 = vsub.f32 %v553_v12, %v320_v33  ;;  %v324_v37 = vsub.f32 %v554_v16, %v320_v33 }
 0x11a   : > { %v325_v38 = vsub.f32 %v291_v15, %v320_v33  ;;  %v326_v39 = vsub.f32 %v294_v19, %v320_v33  ;;  %v327_v40 = vsub.f32 %v557_v13, %v320_v33  ;;  %v328_v41 = vsub.f32 %v558_v17, %v320_v33 }
 0x11b   : > { %v329_v42 = vmul.f32 %v321_v34, %v321_v34  ;;  %v330_v43 = vmul.f32 %v322_v35, %v322_v35  ;;  %v331_v44 = vmul.f32 %v323_v36, %v323_v36  ;;  %v332_v46 = vmul.f32 %v324_v37, %v324_v37 }
 0x11c   : > { %v333_v48 = vmul.f32 %v325_v38, %v325_v38  ;;  %v334_v50 = vmul.f32 %v326_v39, %v326_v39  ;;  %v335_v52 = vmul.f32 %v327_v40, %v327_v40  ;;  %v336_v54 = vmul.f32 %v328_v41, %v328_v41 }
 0x11d   : > { %v337_v45 = vadd.f32 %v330_v43, %v329_v42 }
 0x11f   : > { %v338_v47 = vadd.f32 %v337_v45, %v331_v44 }
 0x121   : > { %v339_v49 = vadd.f32 %v338_v47, %v332_v46 }
 0x123   : > { %v340_v51 = vadd.f32 %v339_v49, %v333_v48 }
 0x125   : > { %v341_v53 = vadd.f32 %v340_v51, %v334_v50 }
 0x127   : > { %v342_v55 = vadd.f32 %v341_v53, %v335_v52 }
 0x129   : > { %v343_v56 = vadd.f32 %v342_v55, %v336_v54 }
 0x12b   : > { %v344_v57 = vrot.slane %v343_v56, 4 }
 0x12d   : > { %v345_v58 = vadd.f32 %v344_v57, %v343_v56 }
 0x12f   : > { %v346_v60 = vrot.slane %v345_v58, 2 }
 0x131   : > { %v347_v61 = vadd.f32 %v346_v60, %v345_v58 }
 0x133   : > { %v348_v63 = vrot.slane %v347_v61, 1 }
 0x135   : > { %v349_v0 = vadd.f32 %v348_v63, %v347_v61 }
 0x137   : > { %v350_v1 = vmul.f32 0.015873017, %v349_v0 }
 0x139   : > { %v354_v2 = vsel %vm353_vm0, %v350_v1, 1.0 }
 0x13a   : > { %595 = vrsqrt.f32 %v354_v2 }
 0x144   : > { %v596_v3 = vpop.eup %595 }
 0x145   : > { %v356_v4 = vmul.f32 %v596_v3, %v321_v34  ;;  %v357_v5 = vmul.f32 %v596_v3, %v322_v35  ;;  %v358_v6 = vmul.f32 %v596_v3, %v323_v36  ;;  %v359_v7 = vmul.f32 %v596_v3, %v324_v37 }
 0x146   : > { %v360_v8 = vmul.f32 %v596_v3, %v325_v38  ;;  %v361_v9 = vmul.f32 %v596_v3, %v326_v39  ;;  %v362_v10 = vmul.f32 %v596_v3, %v327_v40  ;;  %v363_v11 = vmul.f32 %v596_v3, %v328_v41 }
 0x147   : > { %v503_v12 = vpack.c.bf16 %v357_v5, %v356_v4  ;;  %v508_v13 = vpack.c.bf16 %v359_v7, %v358_v6 }
 0x148   : > { %v513_v14 = vpack.c.bf16 %v361_v9, %v360_v8  ;;  %v518_v15 = vpack.c.bf16 %v363_v11, %v362_v10 }
 0x149   : > { %504 = vst [vmem:[%s143_s5] sm:$0xff] %v503_v12   ;;  %520 = vst [vmem:[%s143_s5 + $0x8] sm:$0xff] %v508_v13  }
 0x14a   : > { %521 = vst [vmem:[%s143_s5 + $0x10] sm:$0xff] %v513_v14   ;;  %522 = vst [vmem:[%s143_s5 + $0x18] sm:$0xff] %v518_v15  }
 0x14b PF: > { %s12_s9 = sadd.s32 1, %s603_s9  }
 0x14c   : > { %p9_p4 = scmp.ge.s32.totalorder %s12_s9, 4  }
 0x14e   :  { %11 = sbr.rel (!%p9_p4) target bundleno = 1 (0x1), region = 58 }

// kernel: fwd.7
= control target key start
LH: loop header
LB: loop body
LE: loop exit
PB: predicated region body
PF: predicated region fallthrough
CT: control target
= control target key end

     0   :  { %s1054_s12 = smov 0   ;;  %s1172_s0 = inlined_call_operand.vmem [shape: bf16[2,64,384], index: 0, kind: input, shape index: {}]   ;;  %s1173_s1 = inlined_call_operand.vmem [shape: bf16[384,128], index: 1, kind: input, shape index: {}]   ;;  %s1174_s2 = inlined_call_operand.vmem [shape: bf16[2,64,128], index: 2, kind: input, shape index: {}]   ;;  %s1175_s3 = inlined_call_operand.vmem [shape: bf16[2,64,128], index: 3, kind: output, shape index: {}]  }
   0x1 LB: > { %s791_s13 = sadd.s32 4294967295, %s1032_s12   ;;  %p795_p0 = scmp.ge.s32.totalorder %s1032_s12, 1  ;;  %s1032_s12 = sphi %s1054_s12, %s13_s12  }
   0x2   : > { %p147_p1 = scmp.lt.s32.totalorder %s1032_s12, 3 }
   0x4   : > { %p148_p2 = pnand %p795_p0, %p147_p1 }
   0x5   : > { %v984_v0 = vld [vmem:[%s1173_s1 + $0x40] sm:$0xff] (!%p148_p2)   ;;  %v987_v3 = vld [vmem:[%s1173_s1 + $0x48] sm:$0xff] (!%p148_p2)   ;;  %v990_v6 = vld [vmem:[%s1173_s1 + $0x50] sm:$0xff] (!%p148_p2)   ;;  %p176_p3 = scmp.lt.s32.totalorder (!%p148_p2), %s791_s13, 1 }
   0x6   : > { %151 = sbr.rel (%p148_p2) target bundleno = 351 (0x15f), region = 32  ;;  %v985_v1 = vld [vmem:[%s1173_s1] sm:$0xff] (!%p148_p2)   ;;  %899 = vmatprep.subr.bf16.mxu0 (!%p148_p2), %v984_v0  ;;  %v988_v4 = vld [vmem:[%s1173_s1 + $0x8] sm:$0xff] (!%p148_p2)   ;;  %v991_v7 = vld [vmem:[%s1173_s1 + $0x10] sm:$0xff] (!%p148_p2)  }
   0x7   : > { %v986_v2 = vld [vmem:[%s1173_s1 + $0x80] sm:$0xff] (!%p148_p2)   ;;  %900 = vmatpush3.bf16.msra.mxu0 (!%p148_p2), %v985_v1  ;;  %v989_v5 = vld [vmem:[%s1173_s1 + $0x88] sm:$0xff] (!%p148_p2)   ;;  %v992_v8 = vld [vmem:[%s1173_s1 + $0x90] sm:$0xff] (!%p148_p2)  }
   0x8   : > { %951 = vmatprep.subr.bf16.mxu1 (!%p148_p2), %v986_v2  ;;  %901 = vmatprep.subr.bf16.mxu0 (!%p148_p2), %v987_v3  ;;  %v993_v9 = vld [vmem:[%s1173_s1 + $0x58] sm:$0xff] (!%p148_p2)   ;;  %v996_v12 = vld [vmem:[%s1173_s1 + $0x60] sm:$0xff] (!%p148_p2)   ;;  %v999_v15 = vld [vmem:[%s1173_s1 + $0x68] sm:$0xff] (!%p148_p2)  }
   0x9   : > { %952 = vmatpush3.bf16.msra.mxu1 (!%p148_p2), %v986_v2  ;;  %v994_v10 = vld [vmem:[%s1173_s1 + $0x18] sm:$0xff] (!%p148_p2)   ;;  %v998_v13 = vld [vmem:[%s1173_s1 + $0xa0] sm:$0xff] (!%p148_p2)   ;;  %v1001_v16 = vld [vmem:[%s1173_s1 + $0xa8] sm:$0xff] (!%p148_p2)  }
   0xa   : > { %953 = vmatprep.subr.bf16.mxu1 (!%p148_p2), %v989_v5  ;;  %v995_v11 = vld [vmem:[%s1173_s1 + $0x98] sm:$0xff] (!%p148_p2)   ;;  %v997_v14 = vld [vmem:[%s1173_s1 + $0x20] sm:$0xff] (!%p148_p2)   ;;  %v1000_v17 = vld [vmem:[%s1173_s1 + $0x28] sm:$0xff] (!%p148_p2)  }
   0xb   : > { %902 = vmatpush3.bf16.msra.mxu0 (!%p148_p2), %v988_v4  ;;  %v1002_v18 = vld [vmem:[%s1173_s1 + $0x70] sm:$0xff] (!%p148_p2)   ;;  %v1005_v21 = vld [vmem:[%s1173_s1 + $0x78] sm:$0xff] (!%p148_p2)  }
   0xc   : > { %903 = vmatprep.subr.bf16.mxu0 (!%p148_p2), %v990_v6  ;;  %v1003_v19 = vld [vmem:[%s1173_s1 + $0x30] sm:$0xff] (!%p148_p2)   ;;  %v1007_v22 = vld [vmem:[%s1173_s1 + $0xb8] sm:$0xff] (!%p148_p2)  }
   0xd   : > { %954 = vmatpush3.bf16.msra.mxu1 %v989_v5  ;;  %s1177_s13 = smov (!%p176_p3, %s791_s13), 1  ;;  %v1004_v20 = vld [vmem:[%s1173_s1 + $0xb0] sm:$0xff]   ;;  %v1006_v25 = vld [vmem:[%s1173_s1 + $0x38] sm:$0xff]  }
   0xe   : > { %955 = vmatprep.subr.bf16.mxu1 %v992_v8  ;;  %s975_s23 = smul.u32 96, %s1177_s13  ;;  %s847_s16 = sshll.u32 %s1177_s13, 5 }
   0xf   : > { %904 = vmatpush3.bf16.msra.mxu0 %v991_v7  ;;  %s185_s19 = scalar_lea.vmem %s1174_s2, %s847_s16  ;;  %s190_s22 = scalar_lea.vmem %s1175_s3, %s847_s16 }
  0x10   : > { %905 = vmatprep.subr.bf16.mxu0 %v993_v9  ;;  %s1135_s7 = scalar_lea.vmem %s1172_s0, %s975_s23 }
  0x11   : > { %956 = vmatpush3.bf16.msra.mxu1 %v992_v8  ;;  %v1010_v23 = vld [vmem:[%s1135_s7 + $0x4] ss:$12 sps:$4 sm:$0xff]   ;;  %v1011_v24 = vld [vmem:[%s1135_s7 + $0x8] ss:$12 sps:$4 sm:$0xff]   ;;  %v1008_v26 = vld [vmem:[%s1135_s7] ss:$12 sps:$4 sm:$0xff]  }
  0x12   : > { %957 = vmatprep.subr.bf16.mxu1 %v995_v11  ;;  %496 = vmatprep.mubr.bf16.mxu0 %v1010_v23  ;;  %v1013_v27 = vld [vmem:[%s1135_s7 + $0x1c] ss:$12 sps:$4 sm:$0xff]   ;;  %v1012_v28 = vld [vmem:[%s1135_s7 + $0x20] ss:$12 sps:$4 sm:$0xff]   ;;  %v1019_v29 = vld [vmem:[%s1135_s7 + $0x38] ss:$12 sps:$4 sm:$0xff]  }
  0x13   : > { %906 = vmatpush3.bf16.msra.mxu0 %v994_v10  ;;  %967 = vmatprep.mubr.bf16.mxu1 %v1011_v24  ;;  %v1015_v30 = vld [vmem:[%s1135_s7 + $0x18] ss:$12 sps:$4 sm:$0xff]   ;;  %v1016_v31 = vld [vmem:[%s1135_s7 + $0x34] ss:$12 sps:$4 sm:$0xff]   ;;  %v1020_v32 = vld [vmem:[%s1135_s7 + $0x50] ss:$12 sps:$4 sm:$0xff]  }
  0x14   : > { %907 = vmatprep.subr.bf16.mxu0 %v996_v12  ;;  %v1018_v33 = vld [vmem:[%s1135_s7 + $0x30] ss:$12 sps:$4 sm:$0xff]   ;;  %v1021_v34 = vld [vmem:[%s1135_s7 + $0x4c] ss:$12 sps:$4 sm:$0xff]   ;;  %v1023_v35 = vld [vmem:[%s1135_s7 + $0x48] ss:$12 sps:$4 sm:$0xff]  }
  0x15   : > { %958 = vmatpush3.bf16.msra.mxu1 %v995_v11 }
  0x16   : > { %959 = vmatprep.subr.bf16.mxu1 %v998_v13 }
  0x17   : > { %908 = vmatpush3.bf16.msra.mxu0 %v997_v14 }
  0x18   : > { %909 = vmatprep.subr.bf16.mxu0 %v999_v15 }
  0x19   : > { %960 = vmatpush3.bf16.msra.mxu1 %v998_v13 }
  0x1a   : > { %961 = vmatprep.subr.bf16.mxu1 %v1001_v16 }
  0x1b   : > { %910 = vmatpush3.bf16.msra.mxu0 %v1000_v17 }
  0x1c   : > { %911 = vmatprep.subr.bf16.mxu0 %v1002_v18 }
  0x1d   : > { %962 = vmatpush3.bf16.msra.mxu1 %v1001_v16 }
  0x1e   : > { %963 = vmatprep.subr.bf16.mxu1 %v1004_v20 }
  0x1f   : > { %912 = vmatpush3.bf16.msra.mxu0 %v1003_v19 }
  0x20   : > { %913 = vmatprep.subr.bf16.mxu0 %v1005_v21 }
  0x21   : > { %964 = vmatpush3.bf16.msra.mxu1 %v1004_v20 }
  0x22   : > { %965 = vmatprep.subr.bf16.mxu1 %v1007_v22 }
  0x23   : > { %914 = vmatpush3.bf16.msra.mxu0 %v1006_v25 }
  0x25   : > { %966 = vmatpush3.bf16.msra.mxu1 %v1007_v22 }
  0x26   : > { %497 = vmatmul.mubr.bf16.vlgmr.msra.gmra.mrb[0].mxu0 %v1008_v26 }
  0x27   : > { %504 = vmatprep.mubr.bf16.mxu0 %v1013_v27 }
  0x28   : > { %968 = vmatmul.mubr.bf16.vlgmr.msra.gmra.mrb[0].mxu1 %v1012_v28 }
  0x29   : > { %971 = vmatprep.mubr.bf16.mxu1 %v1019_v29 }
  0x2e   : > { %505 = vmatmul.mubr.bf16.gmra.mrb[4].mxu0 %v1015_v30 }
  0x2f   : > { %512 = vmatprep.mubr.bf16.mxu0 %v1016_v31 }
  0x30   : > { %972 = vmatmul.mubr.bf16.gmra.mrb[4].mxu1 %v1020_v32 }
  0x36   : > { %513 = vmatmul.mubr.bf16.gmra.mrb[8].mxu0 %v1018_v33 }
  0x37   : > { %520 = vmatprep.mubr.bf16.mxu0 %v1021_v34 }
  0x3e   : > { %521 = vmatmul.mubr.bf16.gmra.mrb[12].mxu0 %v1023_v35 }
  0xf9   : > { %v915_v36 = vpop.f32.mrb[0].mxu0 }
  0xfa   : > { %v916_v37 = vpop.f32.mrb[1].mxu0 }
  0xfb   : > { %v917_v38 = vadd.f32 %v916_v37, %v915_v36  ;;  %v918_v39 = vpop.f32.mrb[2].mxu0  ;;  %v969_v40 = vpop.f32.mrb[0].mxu1 }
  0xfc   : > { %v919_v41 = vpop.f32.mrb[3].mxu0  ;;  %v563_v42 = vpop.f32.mrb[1].mxu1 }
  0xfd   : > { %v920_v43 = vadd.f32 %v919_v41, %v918_v39  ;;  %v564_v44 = vadd.f32 %v917_v38, %v563_v42  ;;  %v970_v45 = vpop.f32.mrb[2].mxu1 }
  0xfe   : > { %v566_v46 = vpop.f32.mrb[3].mxu1 }
  0xff   : > { %v567_v47 = vadd.f32 %v920_v43, %v566_v46 }
 0x101   : > { %v594_v48 = vadd.f32 %v567_v47, %v564_v44  ;;  %v921_v49 = vpop.f32.mrb[4].mxu0 }
 0x102   : > { %v922_v50 = vpop.f32.mrb[5].mxu0 }
 0x103   : > { %v923_v51 = vadd.f32 %v922_v50, %v921_v49  ;;  %v924_v52 = vpop.f32.mrb[6].mxu0  ;;  %v973_v53 = vpop.f32.mrb[4].mxu1 }
 0x104   : > { %v925_v54 = vpop.f32.mrb[7].mxu0  ;;  %v579_v55 = vpop.f32.mrb[5].mxu1 }
 0x105   : > { %v572_v56 = vadd.f32 %v969_v40, %v923_v51  ;;  %v926_v57 = vadd.f32 %v925_v54, %v924_v52  ;;  %v974_v58 = vpop.f32.mrb[6].mxu1  ;;  %v639_v51 = vlaneseq }
 0x106   : > { %v582_v59 = vpop.f32.mrb[7].mxu1 }
 0x107   : > { %v595_v60 = vadd.f32 %v594_v48, %v572_v56  ;;  %v575_v61 = vadd.f32 %v970_v45, %v926_v57  ;;  %v640_v54 = vand.u32 127, %v639_v51 }
 0x109   : > { %v927_v62 = vpop.f32.mrb[8].mxu0  ;;  %v596_v63 = vadd.f32 %v595_v60, %v575_v61  ;;  %vm641_vm0 = vcmp.lt.s32.totalorder %v640_v54, 32  ;;  %v893_v60 = vld [vmem:[%s185_s19 + $0x8] sm:$0xff]  }
 0x10a   : > { %v928_v0 = vpop.f32.mrb[9].mxu0 }
 0x10b   : > { %v929_v1 = vadd.f32 %v928_v0, %v927_v62  ;;  %v930_v2 = vpop.f32.mrb[10].mxu0  ;;  %v895_v62 = vld [vmem:[%s185_s19 + $0x18] sm:$0xff]  }
 0x10c   : > { %v931_v3 = vpop.f32.mrb[11].mxu0 }
 0x10d   : > { %v932_v4 = vadd.f32 %v931_v3, %v930_v2  ;;  %v580_v5 = vadd.f32 %v929_v1, %v579_v55  ;;  %v863_v1 = vunpack.c.l.bf16 %v893_v60  ;;  %v864_v2 = vunpack.c.h.bf16 %v893_v60 }
 0x10f   : > { %v597_v6 = vadd.f32 %v596_v63, %v580_v5  ;;  %v583_v7 = vadd.f32 %v932_v4, %v582_v59  ;;  %v858_v59 = vld [vmem:[%s185_s19] sm:$0xff]  }
 0x110   : > { %v859_v63 = vunpack.c.l.bf16 %v858_v59  ;;  %v860_v0 = vunpack.c.h.bf16 %v858_v59 }
 0x111   : > { %v598_v8 = vadd.f32 %v597_v6, %v583_v7  ;;  %v933_v9 = vpop.f32.mrb[12].mxu0  ;;  %v871_v6 = vunpack.c.l.bf16 %v895_v62 }
 0x112   : > { %v934_v10 = vpop.f32.mrb[13].mxu0 }
 0x113   : > { %v935_v11 = vadd.f32 %v934_v10, %v933_v9  ;;  %v936_v12 = vpop.f32.mrb[14].mxu0 }
 0x114   : > { %v937_v13 = vpop.f32.mrb[15].mxu0 }
 0x115   : > { %v588_v14 = vadd.f32 %v973_v53, %v935_v11  ;;  %v938_v15 = vadd.f32 %v937_v13, %v936_v12 }
 0x117   : > { %v599_v16 = vadd.f32 %v598_v8, %v588_v14  ;;  %v591_v17 = vadd.f32 %v974_v58, %v938_v15 }
 0x119   : > { %v600_v18 = vadd.f32 %v599_v16, %v591_v17 }
 0x11b   : > { %v601_v19 = vrot.slane %v600_v18, 4 }
 0x11d   : > { %v602_v20 = vadd.f32 %v601_v19, %v600_v18 }
 0x11f   : > { %v603_v21 = vrot.slane %v602_v20, 2 }
 0x121   : > { %v604_v22 = vadd.f32 %v603_v21, %v602_v20 }
 0x123   : > { %v605_v23 = vrot.slane %v604_v22, 1 }
 0x125   : > { %v606_v24 = vadd.f32 %v605_v23, %v604_v22 }
 0x127   : > { %v608_v25 = vmul.f32 0.015625, %v606_v24 }
 0x129   : > { %v609_v26 = vsub.f32 %v564_v44, %v608_v25  ;;  %v610_v27 = vsub.f32 %v567_v47, %v608_v25  ;;  %v611_v28 = vsub.f32 %v572_v56, %v608_v25  ;;  %v612_v29 = vsub.f32 %v575_v61, %v608_v25  ;;  %v894_v61 = vld [vmem:[%s185_s19 + $0x10] sm:$0xff]  }
 0x12a   : > { %v613_v30 = vsub.f32 %v580_v5, %v608_v25  ;;  %v614_v31 = vsub.f32 %v583_v7, %v608_v25  ;;  %v615_v32 = vsub.f32 %v588_v14, %v608_v25  ;;  %v616_v33 = vsub.f32 %v591_v17, %v608_v25 }
 0x12b   : > { %v617_v34 = vmul.f32 %v609_v26, %v609_v26  ;;  %v618_v35 = vmul.f32 %v610_v27, %v610_v27  ;;  %v619_v36 = vmul.f32 %v611_v28, %v611_v28  ;;  %v620_v38 = vmul.f32 %v612_v29, %v612_v29 }
 0x12c   : > { %v621_v40 = vmul.f32 %v613_v30, %v613_v30  ;;  %v622_v42 = vmul.f32 %v614_v31, %v614_v31  ;;  %v623_v45 = vmul.f32 %v615_v32, %v615_v32  ;;  %v624_v46 = vmul.f32 %v616_v33, %v616_v33 }
 0x12d   : > { %v625_v37 = vadd.f32 %v618_v35, %v617_v34  ;;  %v867_v4 = vunpack.c.l.bf16 %v894_v61  ;;  %v868_v5 = vunpack.c.h.bf16 %v894_v61  ;;  %v872_v7 = vunpack.c.h.bf16 %v895_v62 }
 0x12f   : > { %v626_v39 = vadd.f32 %v625_v37, %v619_v36 }
 0x131   : > { %v627_v41 = vadd.f32 %v626_v39, %v620_v38 }
 0x133   : > { %v628_v43 = vadd.f32 %v627_v41, %v621_v40 }
 0x135   : > { %v629_v44 = vadd.f32 %v628_v43, %v622_v42 }
 0x137   : > { %v630_v47 = vadd.f32 %v629_v44, %v623_v45 }
 0x139   : > { %v631_v48 = vadd.f32 %v630_v47, %v624_v46 }
 0x13b   : > { %v632_v49 = vrot.slane %v631_v48, 4 }
 0x13d   : > { %v633_v50 = vadd.f32 %v632_v49, %v631_v48 }
 0x13f   : > { %v634_v52 = vrot.slane %v633_v50, 2 }
 0x141   : > { %v635_v53 = vadd.f32 %v634_v52, %v633_v50 }
 0x143   : > { %v636_v55 = vrot.slane %v635_v53, 1 }
 0x145   : > { %v637_v56 = vadd.f32 %v636_v55, %v635_v53 }
 0x147   : > { %v638_v57 = vmul.f32 0.015873017, %v637_v56 }
 0x149   : > { %v642_v58 = vsel %vm641_vm0, %v638_v57, 1.0 }
 0x14a   : > { %1024 = vrsqrt.f32 %v642_v58 }
 0x154   : > { %v1025_v3 = vpop.eup %1024 }
 0x155   : > { %v644_v8 = vmul.f32 %v1025_v3, %v609_v26  ;;  %v645_v9 = vmul.f32 %v1025_v3, %v610_v27  ;;  %v646_v10 = vmul.f32 %v1025_v3, %v611_v28  ;;  %v647_v11 = vmul.f32 %v1025_v3, %v612_v29 }
 0x156   : > { %v648_v12 = vmul.f32 %v1025_v3, %v613_v30  ;;  %v649_v13 = vmul.f32 %v1025_v3, %v614_v31  ;;  %v650_v14 = vmul.f32 %v1025_v3, %v615_v32  ;;  %v651_v15 = vmul.f32 %v1025_v3, %v616_v33 }
 0x157   : > { %v668_v16 = vadd.f32 %v859_v63, %v644_v8  ;;  %v669_v17 = vadd.f32 %v860_v0, %v645_v9  ;;  %v670_v18 = vadd.f32 %v863_v1, %v646_v10  ;;  %v671_v19 = vadd.f32 %v864_v2, %v647_v11 }
 0x158   : > { %v672_v20 = vadd.f32 %v867_v4, %v648_v12  ;;  %v673_v21 = vadd.f32 %v868_v5, %v649_v13  ;;  %v674_v22 = vadd.f32 %v871_v6, %v650_v14  ;;  %v675_v23 = vadd.f32 %v872_v7, %v651_v15 }
 0x159   : > { %v676_v24 = vmax.f32 %v668_v16, 0.0  ;;  %v677_v25 = vmax.f32 %v669_v17, 0.0  ;;  %v678_v34 = vmax.f32 %v670_v18, 0.0  ;;  %v679_v26 = vmax.f32 %v671_v19, 0.0 }
 0x15a   : > { %v680_v27 = vmax.f32 %v672_v20, 0.0  ;;  %v681_v28 = vmax.f32 %v673_v21, 0.0  ;;  %v682_v29 = vmax.f32 %v674_v22, 0.0  ;;  %v683_v30 = vmax.f32 %v675_v23, 0.0 }
 0x15b   : > { %v876_v31 = vpack.c.bf16 %v677_v25, %v676_v24  ;;  %v881_v32 = vpack.c.bf16 %v679_v26, %v678_v34 }
 0x15c   : > { %v886_v33 = vpack.c.bf16 %v681_v28, %v680_v27  ;;  %v891_v35 = vpack.c.bf16 %v683_v30, %v682_v29 }
 0x15d   : > { %877 = vst [vmem:[%s190_s22] sm:$0xff] %v876_v31   ;;  %896 = vst [vmem:[%s190_s22 + $0x8] sm:$0xff] %v881_v32  }
 0x15e   : > { %897 = vst [vmem:[%s190_s22 + $0x10] sm:$0xff] %v886_v33   ;;  %898 = vst [vmem:[%s190_s22 + $0x18] sm:$0xff] %v891_v35  }
 0x15f PF: > { %s13_s12 = sadd.s32 1, %s1032_s12  }
 0x160   : > { %p10_p4 = scmp.ge.s32.totalorder %s13_s12, 4  }
 0x162   :  { %12 = sbr.rel (!%p10_p4) target bundleno = 1 (0x1), region = 65 }

// kernel: fwd.8
= control target key start
LH: loop header
LB: loop body
LE: loop exit
PB: predicated region body
PF: predicated region fallthrough
CT: control target
= control target key end

     0   :  { %s944_s9 = smov 0   ;;  %s1055_s0 = inlined_call_operand.vmem [shape: bf16[2,64,384], index: 0, kind: input, shape index: {}]   ;;  %s1056_s1 = inlined_call_operand.vmem [shape: bf16[384,128], index: 1, kind: input, shape index: {}]   ;;  %s1057_s2 = inlined_call_operand.vmem [shape: bf16[2,64,128], index: 2, kind: output, shape index: {}]  }
   0x1 LB: > { %s708_s10 = sadd.s32 4294967295, %s927_s9   ;;  %p712_p0 = scmp.ge.s32.totalorder %s927_s9, 1  ;;  %s927_s9 = sphi %s944_s9, %s12_s9  }
   0x2   : > { %p112_p1 = scmp.lt.s32.totalorder %s927_s9, 3 }
   0x4   : > { %p113_p2 = pnand %p712_p0, %p112_p1 }
   0x5   : > { %v879_v0 = vld [vmem:[%s1056_s1 + $0x40] sm:$0xff] (!%p113_p2)   ;;  %v882_v3 = vld [vmem:[%s1056_s1 + $0x48] sm:$0xff] (!%p113_p2)   ;;  %v885_v6 = vld [vmem:[%s1056_s1 + $0x50] sm:$0xff] (!%p113_p2)   ;;  %p134_p3 = scmp.lt.s32.totalorder (!%p113_p2), %s708_s10, 1 }
   0x6   : > { %116 = sbr.rel (%p113_p2) target bundleno = 349 (0x15d), region = 28  ;;  %v880_v1 = vld [vmem:[%s1056_s1] sm:$0xff] (!%p113_p2)   ;;  %794 = vmatprep.subr.bf16.mxu0 (!%p113_p2), %v879_v0  ;;  %v883_v4 = vld [vmem:[%s1056_s1 + $0x8] sm:$0xff] (!%p113_p2)   ;;  %v886_v7 = vld [vmem:[%s1056_s1 + $0x10] sm:$0xff] (!%p113_p2)  }
   0x7   : > { %v881_v2 = vld [vmem:[%s1056_s1 + $0x80] sm:$0xff] (!%p113_p2)   ;;  %795 = vmatpush3.bf16.msra.mxu0 (!%p113_p2), %v880_v1  ;;  %v884_v5 = vld [vmem:[%s1056_s1 + $0x88] sm:$0xff] (!%p113_p2)   ;;  %v887_v8 = vld [vmem:[%s1056_s1 + $0x90] sm:$0xff] (!%p113_p2)  }
   0x8   : > { %846 = vmatprep.subr.bf16.mxu1 (!%p113_p2), %v881_v2  ;;  %796 = vmatprep.subr.bf16.mxu0 (!%p113_p2), %v882_v3  ;;  %v888_v9 = vld [vmem:[%s1056_s1 + $0x58] sm:$0xff] (!%p113_p2)   ;;  %v891_v12 = vld [vmem:[%s1056_s1 + $0x60] sm:$0xff] (!%p113_p2)   ;;  %v894_v15 = vld [vmem:[%s1056_s1 + $0x68] sm:$0xff] (!%p113_p2)  }
   0x9   : > { %847 = vmatpush3.bf16.msra.mxu1 (!%p113_p2), %v881_v2  ;;  %v889_v10 = vld [vmem:[%s1056_s1 + $0x18] sm:$0xff] (!%p113_p2)   ;;  %v893_v13 = vld [vmem:[%s1056_s1 + $0xa0] sm:$0xff] (!%p113_p2)   ;;  %v896_v16 = vld [vmem:[%s1056_s1 + $0xa8] sm:$0xff] (!%p113_p2)  }
   0xa   : > { %848 = vmatprep.subr.bf16.mxu1 (!%p113_p2), %v884_v5  ;;  %v890_v11 = vld [vmem:[%s1056_s1 + $0x98] sm:$0xff] (!%p113_p2)   ;;  %v892_v14 = vld [vmem:[%s1056_s1 + $0x20] sm:$0xff] (!%p113_p2)   ;;  %v895_v17 = vld [vmem:[%s1056_s1 + $0x28] sm:$0xff] (!%p113_p2)  }
   0xb   : > { %797 = vmatpush3.bf16.msra.mxu0 (!%p113_p2), %v883_v4  ;;  %v897_v18 = vld [vmem:[%s1056_s1 + $0x70] sm:$0xff] (!%p113_p2)   ;;  %v900_v21 = vld [vmem:[%s1056_s1 + $0x78] sm:$0xff] (!%p113_p2)  }
   0xc   : > { %798 = vmatprep.subr.bf16.mxu0 (!%p113_p2), %v885_v6  ;;  %v898_v19 = vld [vmem:[%s1056_s1 + $0x30] sm:$0xff] (!%p113_p2)   ;;  %v902_v22 = vld [vmem:[%s1056_s1 + $0xb8] sm:$0xff] (!%p113_p2)  }
   0xd   : > { %849 = vmatpush3.bf16.msra.mxu1 %v884_v5  ;;  %s1059_s10 = smov (!%p134_p3, %s708_s10), 1  ;;  %v899_v20 = vld [vmem:[%s1056_s1 + $0xb0] sm:$0xff]   ;;  %v901_v25 = vld [vmem:[%s1056_s1 + $0x38] sm:$0xff]  }
   0xe   : > { %850 = vmatprep.subr.bf16.mxu1 %v887_v8  ;;  %s870_s19 = smul.u32 96, %s1059_s10  ;;  %s762_s11 = sshll.u32 %s1059_s10, 5 }
   0xf   : > { %799 = vmatpush3.bf16.msra.mxu0 %v886_v7  ;;  %s143_s14 = scalar_lea.vmem %s1057_s2, %s762_s11 }
  0x10   : > { %800 = vmatprep.subr.bf16.mxu0 %v888_v9  ;;  %s1025_s30 = scalar_lea.vmem %s1055_s0, %s870_s19 }
  0x11   : > { %851 = vmatpush3.bf16.msra.mxu1 %v887_v8  ;;  %v905_v23 = vld [vmem:[%s1025_s30 + $0x4] ss:$12 sps:$4 sm:$0xff]   ;;  %v906_v24 = vld [vmem:[%s1025_s30 + $0x8] ss:$12 sps:$4 sm:$0xff]   ;;  %v903_v26 = vld [vmem:[%s1025_s30] ss:$12 sps:$4 sm:$0xff]  }
  0x12   : > { %852 = vmatprep.subr.bf16.mxu1 %v890_v11  ;;  %449 = vmatprep.mubr.bf16.mxu0 %v905_v23  ;;  %v908_v27 = vld [vmem:[%s1025_s30 + $0x1c] ss:$12 sps:$4 sm:$0xff]   ;;  %v907_v28 = vld [vmem:[%s1025_s30 + $0x20] ss:$12 sps:$4 sm:$0xff]   ;;  %v914_v29 = vld [vmem:[%s1025_s30 + $0x38] ss:$12 sps:$4 sm:$0xff]  }
  0x13   : > { %801 = vmatpush3.bf16.msra.mxu0 %v889_v10  ;;  %862 = vmatprep.mubr.bf16.mxu1 %v906_v24  ;;  %v910_v30 = vld [vmem:[%s1025_s30 + $0x18] ss:$12 sps:$4 sm:$0xff]   ;;  %v911_v31 = vld [vmem:[%s1025_s30 + $0x34] ss:$12 sps:$4 sm:$0xff]   ;;  %v915_v32 = vld [vmem:[%s1025_s30 + $0x50] ss:$12 sps:$4 sm:$0xff]  }
  0x14   : > { %802 = vmatprep.subr.bf16.mxu0 %v891_v12  ;;  %v913_v33 = vld [vmem:[%s1025_s30 + $0x30] ss:$12 sps:$4 sm:$0xff]   ;;  %v916_v34 = vld [vmem:[%s1025_s30 + $0x4c] ss:$12 sps:$4 sm:$0xff]   ;;  %v918_v35 = vld [vmem:[%s1025_s30 + $0x48] ss:$12 sps:$4 sm:$0xff]  }
  0x15   : > { %853 = vmatpush3.bf16.msra.mxu1 %v890_v11 }
  0x16   : > { %854 = vmatprep.subr.bf16.mxu1 %v893_v13 }
  0x17   : > { %803 = vmatpush3.bf16.msra.mxu0 %v892_v14 }
  0x18   : > { %804 = vmatprep.subr.bf16.mxu0 %v894_v15 }
  0x19   : > { %855 = vmatpush3.bf16.msra.mxu1 %v893_v13 }
  0x1a   : > { %856 = vmatprep.subr.bf16.mxu1 %v896_v16 }
  0x1b   : > { %805 = vmatpush3.bf16.msra.mxu0 %v895_v17 }
  0x1c   : > { %806 = vmatprep.subr.bf16.mxu0 %v897_v18 }
  0x1d   : > { %857 = vmatpush3.bf16.msra.mxu1 %v896_v16 }
  0x1e   : > { %858 = vmatprep.subr.bf16.mxu1 %v899_v20 }
  0x1f   : > { %807 = vmatpush3.bf16.msra.mxu0 %v898_v19 }
  0x20   : > { %808 = vmatprep.subr.bf16.mxu0 %v900_v21 }
  0x21   : > { %859 = vmatpush3.bf16.msra.mxu1 %v899_v20 }
  0x22   : > { %860 = vmatprep.subr.bf16.mxu1 %v902_v22 }
  0x23   : > { %809 = vmatpush3.bf16.msra.mxu0 %v901_v25 }
  0x25   : > { %861 = vmatpush3.bf16.msra.mxu1 %v902_v22 }
  0x26   : > { %450 = vmatmul.mubr.bf16.vlgmr.msra.gmra.mrb[0].mxu0 %v903_v26 }
  0x27   : > { %457 = vmatprep.mubr.bf16.mxu0 %v908_v27 }
  0x28   : > { %863 = vmatmul.mubr.bf16.vlgmr.msra.gmra.mrb[0].mxu1 %v907_v28 }
  0x29   : > { %866 = vmatprep.mubr.bf16.mxu1 %v914_v29 }
  0x2e   : > { %458 = vmatmul.mubr.bf16.gmra.mrb[4].mxu0 %v910_v30 }
  0x2f   : > { %465 = vmatprep.mubr.bf16.mxu0 %v911_v31 }
  0x30   : > { %867 = vmatmul.mubr.bf16.gmra.mrb[4].mxu1 %v915_v32 }
  0x36   : > { %466 = vmatmul.mubr.bf16.gmra.mrb[8].mxu0 %v913_v33 }
  0x37   : > { %473 = vmatprep.mubr.bf16.mxu0 %v916_v34 }
  0x3e   : > { %474 = vmatmul.mubr.bf16.gmra.mrb[12].mxu0 %v918_v35 }
  0xf9   : > { %v810_v36 = vpop.f32.mrb[0].mxu0 }
  0xfa   : > { %v811_v37 = vpop.f32.mrb[1].mxu0 }
  0xfb   : > { %v812_v38 = vadd.f32 %v811_v37, %v810_v36  ;;  %v813_v39 = vpop.f32.mrb[2].mxu0  ;;  %v864_v40 = vpop.f32.mrb[0].mxu1 }
  0xfc   : > { %v814_v41 = vpop.f32.mrb[3].mxu0  ;;  %v516_v42 = vpop.f32.mrb[1].mxu1 }
  0xfd   : > { %v815_v43 = vadd.f32 %v814_v41, %v813_v39  ;;  %v517_v44 = vadd.f32 %v812_v38, %v516_v42  ;;  %v865_v45 = vpop.f32.mrb[2].mxu1 }
  0xfe   : > { %v519_v46 = vpop.f32.mrb[3].mxu1 }
  0xff   : > { %v520_v47 = vadd.f32 %v815_v43, %v519_v46 }
 0x101   : > { %v547_v48 = vadd.f32 %v520_v47, %v517_v44  ;;  %v816_v49 = vpop.f32.mrb[4].mxu0 }
 0x102   : > { %v817_v50 = vpop.f32.mrb[5].mxu0 }
 0x103   : > { %v818_v51 = vadd.f32 %v817_v50, %v816_v49  ;;  %v819_v52 = vpop.f32.mrb[6].mxu0  ;;  %v868_v53 = vpop.f32.mrb[4].mxu1 }
 0x104   : > { %v820_v54 = vpop.f32.mrb[7].mxu0  ;;  %v532_v55 = vpop.f32.mrb[5].mxu1 }
 0x105   : > { %v525_v56 = vadd.f32 %v864_v40, %v818_v51  ;;  %v821_v57 = vadd.f32 %v820_v54, %v819_v52  ;;  %v869_v58 = vpop.f32.mrb[6].mxu1  ;;  %v592_v51 = vlaneseq }
 0x106   : > { %v535_v59 = vpop.f32.mrb[7].mxu1 }
 0x107   : > { %v548_v60 = vadd.f32 %v547_v48, %v525_v56  ;;  %v528_v61 = vadd.f32 %v865_v45, %v821_v57  ;;  %v593_v54 = vand.u32 127, %v592_v51 }
 0x109   : > { %v822_v62 = vpop.f32.mrb[8].mxu0  ;;  %v549_v63 = vadd.f32 %v548_v60, %v528_v61  ;;  %vm594_vm0 = vcmp.lt.s32.totalorder %v593_v54, 32 }
 0x10a   : > { %v823_v0 = vpop.f32.mrb[9].mxu0 }
 0x10b   : > { %v824_v1 = vadd.f32 %v823_v0, %v822_v62  ;;  %v825_v2 = vpop.f32.mrb[10].mxu0 }
 0x10c   : > { %v826_v3 = vpop.f32.mrb[11].mxu0 }
 0x10d   : > { %v827_v4 = vadd.f32 %v826_v3, %v825_v2  ;;  %v533_v5 = vadd.f32 %v824_v1, %v532_v55 }
 0x10f   : > { %v550_v6 = vadd.f32 %v549_v63, %v533_v5  ;;  %v536_v7 = vadd.f32 %v827_v4, %v535_v59 }
 0x111   : > { %v551_v8 = vadd.f32 %v550_v6, %v536_v7  ;;  %v828_v9 = vpop.f32.mrb[12].mxu0 }
 0x112   : > { %v829_v10 = vpop.f32.mrb[13].mxu0 }
 0x113   : > { %v830_v11 = vadd.f32 %v829_v10, %v828_v9  ;;  %v831_v12 = vpop.f32.mrb[14].mxu0 }
 0x114   : > { %v832_v13 = vpop.f32.mrb[15].mxu0 }
 0x115   : > { %v541_v14 = vadd.f32 %v868_v53, %v830_v11  ;;  %v833_v15 = vadd.f32 %v832_v13, %v831_v12 }
 0x117   : > { %v552_v16 = vadd.f32 %v551_v8, %v541_v14  ;;  %v544_v17 = vadd.f32 %v869_v58, %v833_v15 }
 0x119   : > { %v553_v18 = vadd.f32 %v552_v16, %v544_v17 }
 0x11b   : > { %v554_v19 = vrot.slane %v553_v18, 4 }
 0x11d   : > { %v555_v20 = vadd.f32 %v554_v19, %v553_v18 }
 0x11f   : > { %v556_v21 = vrot.slane %v555_v20, 2 }
 0x121   : > { %v557_v22 = vadd.f32 %v556_v21, %v555_v20 }
 0x123   : > { %v558_v23 = vrot.slane %v557_v22, 1 }
 0x125   : > { %v559_v24 = vadd.f32 %v558_v23, %v557_v22 }
 0x127   : > { %v561_v25 = vmul.f32 0.015625, %v559_v24 }
 0x129   : > { %v562_v26 = vsub.f32 %v517_v44, %v561_v25  ;;  %v563_v27 = vsub.f32 %v520_v47, %v561_v25  ;;  %v564_v28 = vsub.f32 %v525_v56, %v561_v25  ;;  %v565_v29 = vsub.f32 %v528_v61, %v561_v25 }
 0x12a   : > { %v566_v30 = vsub.f32 %v533_v5, %v561_v25  ;;  %v567_v31 = vsub.f32 %v536_v7, %v561_v25  ;;  %v568_v32 = vsub.f32 %v541_v14, %v561_v25  ;;  %v569_v33 = vsub.f32 %v544_v17, %v561_v25 }
 0x12b   : > { %v570_v34 = vmul.f32 %v562_v26, %v562_v26  ;;  %v571_v35 = vmul.f32 %v563_v27, %v563_v27  ;;  %v572_v36 = vmul.f32 %v564_v28, %v564_v28  ;;  %v573_v38 = vmul.f32 %v565_v29, %v565_v29 }
 0x12c   : > { %v574_v40 = vmul.f32 %v566_v30, %v566_v30  ;;  %v575_v42 = vmul.f32 %v567_v31, %v567_v31  ;;  %v576_v45 = vmul.f32 %v568_v32, %v568_v32  ;;  %v577_v44 = vmul.f32 %v569_v33, %v569_v33 }
 0x12d   : > { %v578_v37 = vadd.f32 %v571_v35, %v570_v34 }
 0x12f   : > { %v579_v39 = vadd.f32 %v578_v37, %v572_v36 }
 0x131   : > { %v580_v41 = vadd.f32 %v579_v39, %v573_v38 }
 0x133   : > { %v581_v43 = vadd.f32 %v580_v41, %v574_v40 }
 0x135   : > { %v582_v46 = vadd.f32 %v581_v43, %v575_v42 }
 0x137   : > { %v583_v47 = vadd.f32 %v582_v46, %v576_v45 }
 0x139   : > { %v584_v48 = vadd.f32 %v583_v47, %v577_v44 }
 0x13b   : > { %v585_v49 = vrot.slane %v584_v48, 4 }
 0x13d   : > { %v586_v50 = vadd.f32 %v585_v49, %v584_v48 }
 0x13f   : > { %v587_v52 = vrot.slane %v586_v50, 2 }
 0x141   : > { %v588_v53 = vadd.f32 %v587_v52, %v586_v50 }
 0x143   : > { %v589_v55 = vrot.slane %v588_v53, 1 }
 0x145   : > { %v590_v56 = vadd.f32 %v589_v55, %v588_v53 }
 0x147   : > { %v591_v57 = vmul.f32 0.015873017, %v590_v56 }
 0x149   : > { %v595_v58 = vsel %vm594_vm0, %v591_v57, 1.0 }
 0x14a   : > { %919 = vrsqrt.f32 %v595_v58 }
 0x154   : > { %v920_v59 = vpop.eup %919 }
 0x155   : > { %v597_v60 = vmul.f32 %v920_v59, %v562_v26  ;;  %v598_v61 = vmul.f32 %v920_v59, %v563_v27  ;;  %v599_v62 = vmul.f32 %v920_v59, %v564_v28  ;;  %v600_v63 = vmul.f32 %v920_v59, %v565_v29 }
 0x156   : > { %v601_v0 = vmul.f32 %v920_v59, %v566_v30  ;;  %v602_v1 = vmul.f32 %v920_v59, %v567_v31  ;;  %v603_v2 = vmul.f32 %v920_v59, %v568_v32  ;;  %v604_v3 = vmul.f32 %v920_v59, %v569_v33 }
 0x157   : > { %v605_v4 = vmax.f32 %v597_v60, 0.0  ;;  %v606_v5 = vmax.f32 %v598_v61, 0.0  ;;  %v607_v6 = vmax.f32 %v599_v62, 0.0  ;;  %v608_v7 = vmax.f32 %v600_v63, 0.0 }
 0x158   : > { %v609_v8 = vmax.f32 %v601_v0, 0.0  ;;  %v610_v9 = vmax.f32 %v602_v1, 0.0  ;;  %v611_v10 = vmax.f32 %v603_v2, 0.0  ;;  %v612_v11 = vmax.f32 %v604_v3, 0.0 }
 0x159   : > { %v774_v12 = vpack.c.bf16 %v606_v5, %v605_v4  ;;  %v779_v13 = vpack.c.bf16 %v608_v7, %v607_v6 }
 0x15a   : > { %v784_v14 = vpack.c.bf16 %v610_v9, %v609_v8  ;;  %v789_v15 = vpack.c.bf16 %v612_v11, %v611_v10 }
 0x15b   : > { %775 = vst [vmem:[%s143_s14] sm:$0xff] %v774_v12   ;;  %791 = vst [vmem:[%s143_s14 + $0x8] sm:$0xff] %v779_v13  }
 0x15c   : > { %792 = vst [vmem:[%s143_s14 + $0x10] sm:$0xff] %v784_v14   ;;  %793 = vst [vmem:[%s143_s14 + $0x18] sm:$0xff] %v789_v15  }
 0x15d PF: > { %s12_s9 = sadd.s32 1, %s927_s9  }
 0x15e   : > { %p9_p4 = scmp.ge.s32.totalorder %s12_s9, 4  }
 0x160   :  { %11 = sbr.rel (!%p9_p4) target bundleno = 1 (0x1), region = 58 }

</bundles_post_ra>
